<compile_context>
chip_gen: v7x
topology: tpu7x:2x2x1
jax: 0.10.0
libtpu: 0.0.40
codegen_flags: <defaults>
</compile_context>

<pallas_src>
import functools

import numpy as np
import jax
import jax.numpy as jnp
from jax.experimental import pallas as pl
from jax.experimental.pallas import tpu as pltpu


# ----------------------------- in-kernel helpers ---------------------------

_SQRT_HALF = 0.7071067811865476


def _erf(z):
    # TODO(synk): lax.erf has no Pallas/Mosaic lowering; use the
    # Abramowitz-Stegun 7.1.26 polynomial (|err| <= 1.5e-7 ~= f32 eps) so the
    # exact-GELU epilogue can stay fused inside the kernel.
    az = jnp.abs(z)
    t = 1.0 / (1.0 + 0.3275911 * az)
    poly = t * (0.254829592
                + t * (-0.284496736
                       + t * (1.421413741
                              + t * (-1.453152027 + t * 1.061405429))))
    y = 1.0 - poly * jnp.exp(-az * az)
    return jnp.where(z < 0.0, -y, y)


def _gelu_exact(x):
    # matches torch.nn.GELU() (erf form) to ~1e-7
    return 0.5 * x * (1.0 + _erf(x * _SQRT_HALF))


def _layernorm(x, gamma, beta, eps):
    mean = jnp.mean(x, axis=-1, keepdims=True)
    xc = x - mean
    var = jnp.mean(xc * xc, axis=-1, keepdims=True)   # biased var (PyTorch LN)
    return xc * jax.lax.rsqrt(var + eps) * gamma + beta


# --------------------- fused transformer-block kernel ----------------------

def _block_kernel(x_ref, ln1g_ref, ln1b_ref, wqkv_ref, bqkv_ref, wo_ref, bo_ref,
                  ln2g_ref, ln2b_ref, w1_ref, b1_ref, w2_ref, b2_ref, o_ref,
                  *, n_heads, head_size, scale, eps):
    x = x_ref[0]                                   # (S, D) f32, one batch row
    D = x.shape[-1]

    # ---- LN1 + fused QKV projection ---------------------------------------
    h = _layernorm(x, ln1g_ref[...], ln1b_ref[...], eps)
    qkv = jnp.dot(h, wqkv_ref[...],
                  preferred_element_type=jnp.float32) + bqkv_ref[...]   # (S,3D)

    # ---- multi-head attention + output projection (all heads in-kernel) ---
    wo = wo_ref[...]                               # (D, D)
    attn_proj = None
    for hd in range(n_heads):
        lo = hd * head_size
        q = qkv[:, lo:lo + head_size] * scale      # fold 1/sqrt(hs) into Q
        k = qkv[:, D + lo:D + lo + head_size]
        v = qkv[:, 2 * D + lo:2 * D + lo + head_size]
        s = jax.lax.dot_general(q, k, (((1,), (1,)), ((), ())),
                                preferred_element_type=jnp.float32)     # (S,S)
        m = jnp.max(s, axis=-1, keepdims=True)
        p = jnp.exp(s - m)
        # exact reciprocal; flip approx=True on v5e if tolerance permits
        p = p * pl.reciprocal(jnp.sum(p, axis=-1, keepdims=True), approx=False)
        ctx = jnp.dot(p, v, preferred_element_type=jnp.float32)         # (S,hs)
        # concat(ctx_h) @ W_o == sum_h ctx_h @ W_o[h*hs:(h+1)*hs, :]
        contrib = jnp.dot(ctx, wo[lo:lo + head_size, :],
                          preferred_element_type=jnp.float32)           # (S,D)
        attn_proj = contrib if attn_proj is None else attn_proj + contrib

    x = x + attn_proj + bo_ref[...]                # residual 1

    # ---- LN2 + MLP (GELU fused; 4D-wide intermediate never leaves VMEM) ---
    h2 = _layernorm(x, ln2g_ref[...], ln2b_ref[...], eps)
    m1 = jnp.dot(h2, w1_ref[...], preferred_element_type=jnp.float32) + b1_ref[...]
    m1 = _gelu_exact(m1)
    m2 = jnp.dot(m1, w2_ref[...], preferred_element_type=jnp.float32) + b2_ref[...]
    o_ref[0] = (x + m2).astype(o_ref.dtype)        # residual 2


def transformer_block(x, blk, *, n_heads, eps=1e-5):
    """One fused Pallas call for a whole TransformerBlock.  x: (B, S, D) f32."""
    B, S, D = x.shape
    hs = D // n_heads
    kern = functools.partial(_block_kernel, n_heads=n_heads, head_size=hs,
                             scale=1.0 / (hs ** 0.5), eps=eps)
    row = lambda n: pl.BlockSpec((1, n), lambda b: (0, 0))       # (1,N) params
    mat = lambda k, n: pl.BlockSpec((k, n), lambda b: (0, 0))    # full weights
    xspec = pl.BlockSpec((1, S, D), lambda b: (b, 0, 0))         # per-batch row

    return pl.pallas_call(
        kern,
        out_shape=jax.ShapeDtypeStruct((B, S, D), jnp.float32),
        grid=(B,),
        in_specs=[
            xspec,
            row(D), row(D),                    # ln1 gamma, beta
            mat(D, 3 * D), row(3 * D),         # fused W_qkv, b_qkv
            mat(D, D), row(D),                 # W_o, b_o
            row(D), row(D),                    # ln2 gamma, beta
            mat(D, 4 * D), row(4 * D),         # W_1, b_1
            mat(4 * D, D), row(D),             # W_2, b_2
        ],
        out_specs=xspec,
        compiler_params=pltpu.CompilerParams(
            dimension_semantics=("parallel",)),   # v7x: batches across 2 TCs
    )(x,
      blk["ln1_g"].reshape(1, D), blk["ln1_b"].reshape(1, D),
      blk["wqkv"], blk["bqkv"].reshape(1, 3 * D),
      blk["wo"], blk["bo"].reshape(1, D),
      blk["ln2_g"].reshape(1, D), blk["ln2_b"].reshape(1, D),
      blk["w1"], blk["b1"].reshape(1, 4 * D),
      blk["w2"], blk["b2"].reshape(1, D))


# ----------------------- fused board-predictor kernel ----------------------

def _head_kernel(x_ref, w1_ref, b1_ref, w2_ref, b2_ref, o_ref):
    h = jnp.dot(x_ref[...], w1_ref[...],
                preferred_element_type=jnp.float32) + b1_ref[...]
    h = _gelu_exact(h)
    o = jnp.dot(h, w2_ref[...], preferred_element_type=jnp.float32) + b2_ref[...]
    o_ref[...] = o.astype(o_ref.dtype)


def predictor_head(cls, w1, b1, w2, b2):
    """Linear -> GELU -> Linear on the board token.  cls: (B, D) f32."""
    B, D = cls.shape
    N1, N2 = w1.shape[1], w2.shape[1]
    return pl.pallas_call(
        _head_kernel,
        out_shape=jax.ShapeDtypeStruct((B, N2), jnp.float32),
        grid=(1,),
        in_specs=[
            pl.BlockSpec((B, D), lambda i: (0, 0)),
            pl.BlockSpec((D, N1), lambda i: (0, 0)),
            pl.BlockSpec((1, N1), lambda i: (0, 0)),
            pl.BlockSpec((N1, N2), lambda i: (0, 0)),
            pl.BlockSpec((1, N2), lambda i: (0, 0)),
        ],
        out_specs=pl.BlockSpec((B, N2), lambda i: (0, 0)),
    )(cls, w1, b1.reshape(1, N1), w2, b2.reshape(1, N2))


# ------------------------------- JAX glue ----------------------------------

def _conv2d(x, w, b, *, stride, padding):
    """NCHW conv via XLA's native conv (reviewer-endorsed for these tiny,
    lane-sparse channel counts)."""
    out = jax.lax.conv_general_dilated(
        x, w,
        window_strides=(stride, stride),
        padding=((padding, padding), (padding, padding)),
        dimension_numbers=("NCHW", "OIHW", "NCHW"))
    return out + b[None, :, None, None]


@functools.partial(jax.jit, static_argnames=("n_heads", "conv3_stride"))
def forward(params, images, *, n_heads, conv3_stride):
    B = images.shape[0]
    # --- PatchEmbedding ---
    x = jax.nn.gelu(_conv2d(images, params["conv1_w"], params["conv1_b"],
                            stride=1, padding=2), approximate=False)
    x = jax.nn.gelu(_conv2d(x, params["conv2_w"], params["conv2_b"],
                            stride=2, padding=1), approximate=False)
    x = _conv2d(x, params["conv3_w"], params["conv3_b"],
                stride=conv3_stride, padding=0)
    _, D, OH, OW = x.shape
    x = x.reshape(B, D, OH * OW).transpose(0, 2, 1)          # (B, n_patches, D)

    # --- board token + positional encoding ---
    tok = jnp.broadcast_to(params["board_token"], (B, 1, D))
    x = jnp.concatenate([tok, x], axis=1)                    # (B, S, D)
    x = x + params["pe"][None]

    # --- transformer encoder: ONE fused Pallas kernel per block ---
    for blk in params["blocks"]:
        x = transformer_block(x, blk, n_heads=n_heads)

    # --- board predictor on the board token (one fused kernel) ---
    return predictor_head(x[:, 0], params["wp1"], params["bp1"],
                          params["wp2"], params["bp2"])      # (B, 8)


# ---------------------------- parameter init -------------------------------

def _uniform(key, shape, bound):
    return jax.random.uniform(key, shape, jnp.float32, -bound, bound)


def init_params(key, *, d_model, img_size, patch_size, n_channels,
                n_heads, n_sa_blocks):
    keys = iter(jax.random.split(key, 256))
    nk = lambda: next(keys)

    def conv_init(oc, ic, k):
        b = float(1.0 / np.sqrt(ic * k * k))
        return _uniform(nk(), (oc, ic, k, k), b), _uniform(nk(), (oc,), b)

    def lin_init(fi, fo):
        b = float(1.0 / np.sqrt(fi))
        return _uniform(nk(), (fi, fo), b), _uniform(nk(), (fo,), b)

    p = {}
    p["conv1_w"], p["conv1_b"] = conv_init(8, n_channels, 5)
    p["conv2_w"], p["conv2_b"] = conv_init(16, 8, 3)
    p["conv3_w"], p["conv3_b"] = conv_init(d_model, 16, patch_size[0])

    n_patches = int((img_size[0] / 2 / (patch_size[0] / 2) - 1)
                    * (img_size[1] / 2 / (patch_size[1] / 2) - 1))
    max_seq = n_patches + 1

    pe = np.zeros((max_seq, d_model), dtype=np.float32)
    for pos in range(max_seq):
        for i in range(d_model):
            if i % 2 == 0:
                pe[pos, i] = np.sin(pos / 10000 ** (i / d_model))
            else:
                pe[pos, i] = np.cos(pos / 10000 ** ((i - 1) / d_model))
    p["pe"] = jnp.asarray(pe)

    p["board_token"] = jax.random.normal(nk(), (1, 1, d_model), jnp.float32)

    blocks = []
    for _ in range(n_sa_blocks):
        blk = {}
        blk["ln1_g"] = jnp.ones((d_model,), jnp.float32)
        blk["ln1_b"] = jnp.zeros((d_model,), jnp.float32)
        # fused QKV weight, columns laid out [Q heads | K heads | V heads]
        blk["wqkv"], blk["bqkv"] = lin_init(d_model, 3 * d_model)
        blk["wo"], blk["bo"] = lin_init(d_model, d_model)
        blk["ln2_g"] = jnp.ones((d_model,), jnp.float32)
        blk["ln2_b"] = jnp.zeros((d_model,), jnp.float32)
        blk["w1"], blk["b1"] = lin_init(d_model, 4 * d_model)
        blk["w2"], blk["b2"] = lin_init(4 * d_model, d_model)
        blocks.append(blk)
    p["blocks"] = blocks

    p["wp1"], p["bp1"] = lin_init(d_model, d_model)
    p["wp2"], p["bp2"] = lin_init(d_model, 8)
    return p


# --------------------------------- main ------------------------------------

if __name__ == "__main__":
    d_model = 32
    img_size = (16, 16)
    patch_size = (4, 4)
    n_channels = 4
    n_heads = 4
    n_sa_blocks = 2
    batch = 2

    key = jax.random.PRNGKey(0)
    pkey, xkey = jax.random.split(key)

    params = init_params(pkey, d_model=d_model, img_size=img_size,
                         patch_size=patch_size, n_channels=n_channels,
                         n_heads=n_heads, n_sa_blocks=n_sa_blocks)
    images = jax.random.normal(
        xkey, (batch, n_channels, img_size[0], img_size[1]), jnp.float32)

    out = forward(params, images, n_heads=n_heads,
                  conv3_stride=patch_size[0] // 2)
    out = jax.block_until_ready(out)
    assert out.shape == (batch, 8), out.shape
    assert bool(jnp.all(jnp.isfinite(out)))
    print("KERNEL_OK")
</pallas_src>

<mosaic_0001>
module attributes {stable_mosaic.version = 11 : i64} {
  func.func @_block_kernel(%arg0: i32, %arg1: memref<1x10x32xf32, #tpu.memory_space<vmem>>, %arg2: memref<1x32xf32, #tpu.memory_space<vmem>>, %arg3: memref<1x32xf32, #tpu.memory_space<vmem>>, %arg4: memref<32x96xf32, #tpu.memory_space<vmem>>, %arg5: memref<1x96xf32, #tpu.memory_space<vmem>>, %arg6: memref<32x32xf32, #tpu.memory_space<vmem>>, %arg7: memref<1x32xf32, #tpu.memory_space<vmem>>, %arg8: memref<1x32xf32, #tpu.memory_space<vmem>>, %arg9: memref<1x32xf32, #tpu.memory_space<vmem>>, %arg10: memref<32x128xf32, #tpu.memory_space<vmem>>, %arg11: memref<1x128xf32, #tpu.memory_space<vmem>>, %arg12: memref<128x32xf32, #tpu.memory_space<vmem>>, %arg13: memref<1x32xf32, #tpu.memory_space<vmem>>, %arg14: memref<1x10x32xf32, #tpu.memory_space<vmem>>) attributes {dimension_semantics = [#tpu.dimension_semantics<parallel>], iteration_bounds = array<i64: 2>, scalar_prefetch = 0 : i64, scratch_operands = 0 : i64, tpu.core_type = #tpu.core_type<tc>, window_params = [{transform_indices = @transform_0, window_bounds = array<i64: 1, 10, 32>}, {pipeline_mode = #tpu.pipeline_mode<synchronous>, transform_indices = @transform_1, window_bounds = array<i64: 1, 32>}, {pipeline_mode = #tpu.pipeline_mode<synchronous>, transform_indices = @transform_2, window_bounds = array<i64: 1, 32>}, {pipeline_mode = #tpu.pipeline_mode<synchronous>, transform_indices = @transform_3, window_bounds = array<i64: 32, 96>}, {pipeline_mode = #tpu.pipeline_mode<synchronous>, transform_indices = @transform_4, window_bounds = array<i64: 1, 96>}, {pipeline_mode = #tpu.pipeline_mode<synchronous>, transform_indices = @transform_5, window_bounds = array<i64: 32, 32>}, {pipeline_mode = #tpu.pipeline_mode<synchronous>, transform_indices = @transform_6, window_bounds = array<i64: 1, 32>}, {pipeline_mode = #tpu.pipeline_mode<synchronous>, transform_indices = @transform_7, window_bounds = array<i64: 1, 32>}, {pipeline_mode = #tpu.pipeline_mode<synchronous>, transform_indices = @transform_8, window_bounds = array<i64: 1, 32>}, {pipeline_mode = #tpu.pipeline_mode<synchronous>, transform_indices = @transform_9, window_bounds = array<i64: 32, 128>}, {pipeline_mode = #tpu.pipeline_mode<synchronous>, transform_indices = @transform_10, window_bounds = array<i64: 1, 128>}, {pipeline_mode = #tpu.pipeline_mode<synchronous>, transform_indices = @transform_11, window_bounds = array<i64: 128, 32>}, {pipeline_mode = #tpu.pipeline_mode<synchronous>, transform_indices = @transform_12, window_bounds = array<i64: 1, 32>}, {transform_indices = @transform_13, window_bounds = array<i64: 1, 10, 32>}]} {
    %c0 = arith.constant 0 : index
    %c0_0 = arith.constant 0 : index
    %c0_1 = arith.constant 0 : index
    %0 = vector.load %arg1[%c0, %c0_0, %c0_1] : memref<1x10x32xf32, #tpu.memory_space<vmem>>, vector<1x10x32xf32>
    %1 = vector.shape_cast %0 : vector<1x10x32xf32> to vector<10x32xf32>
    %c0_2 = arith.constant 0 : index
    %c0_3 = arith.constant 0 : index
    %2 = vector.load %arg2[%c0_2, %c0_3] : memref<1x32xf32, #tpu.memory_space<vmem>>, vector<1x32xf32>
    %c0_4 = arith.constant 0 : index
    %c0_5 = arith.constant 0 : index
    %3 = vector.load %arg3[%c0_4, %c0_5] : memref<1x32xf32, #tpu.memory_space<vmem>>, vector<1x32xf32>
    %cst = arith.constant dense<0.000000e+00> : vector<10xf32>
    %4 = vector.multi_reduction <add>, %1, %cst [1] : vector<10x32xf32> to vector<10xf32>
    %5 = vector.shape_cast %4 : vector<10xf32> to vector<10x1xf32>
    %cst_6 = arith.constant 3.200000e+01 : f32
    %6 = vector.broadcast %cst_6 : f32 to vector<10x1xf32>
    %7 = arith.divf %5, %6 : vector<10x1xf32>
    %8 = vector.broadcast %7 : vector<10x1xf32> to vector<10x32xf32>
    %9 = arith.subf %1, %8 : vector<10x32xf32>
    %10 = arith.mulf %9, %9 : vector<10x32xf32>
    %cst_7 = arith.constant dense<0.000000e+00> : vector<10xf32>
    %11 = vector.multi_reduction <add>, %10, %cst_7 [1] : vector<10x32xf32> to vector<10xf32>
    %12 = vector.shape_cast %11 : vector<10xf32> to vector<10x1xf32>
    %cst_8 = arith.constant 3.200000e+01 : f32
    %13 = vector.broadcast %cst_8 : f32 to vector<10x1xf32>
    %14 = arith.divf %12, %13 : vector<10x1xf32>
    %cst_9 = arith.constant 9.99999974E-6 : f32
    %15 = vector.broadcast %cst_9 : f32 to vector<10x1xf32>
    %16 = arith.addf %14, %15 : vector<10x1xf32>
    %17 = math.rsqrt %16 : vector<10x1xf32>
    %18 = vector.broadcast %17 : vector<10x1xf32> to vector<10x32xf32>
    %19 = arith.mulf %9, %18 : vector<10x32xf32>
    %20 = vector.broadcast %2 : vector<1x32xf32> to vector<10x32xf32>
    %21 = arith.mulf %19, %20 : vector<10x32xf32>
    %22 = vector.broadcast %3 : vector<1x32xf32> to vector<10x32xf32>
    %23 = arith.addf %21, %22 : vector<10x32xf32>
    %c0_10 = arith.constant 0 : index
    %c0_11 = arith.constant 0 : index
    %24 = vector.load %arg4[%c0_10, %c0_11] : memref<32x96xf32, #tpu.memory_space<vmem>>, vector<32x96xf32>
    %cst_12 = arith.constant dense<0.000000e+00> : vector<10x96xf32>
    %25 = tpu.matmul %23, %24, %cst_12 {dimension_numbers = #tpu.dot_dimension_numbers<[1], [0], [0], [1], [0, 0, 1, 1], [], []>} : vector<10x32xf32>, vector<32x96xf32>, vector<10x96xf32> -> vector<10x96xf32>
    %c0_13 = arith.constant 0 : index
    %c0_14 = arith.constant 0 : index
    %26 = vector.load %arg5[%c0_13, %c0_14] : memref<1x96xf32, #tpu.memory_space<vmem>>, vector<1x96xf32>
    %27 = vector.broadcast %26 : vector<1x96xf32> to vector<10x96xf32>
    %28 = arith.addf %25, %27 : vector<10x96xf32>
    %c0_15 = arith.constant 0 : index
    %c0_16 = arith.constant 0 : index
    %29 = vector.load %arg6[%c0_15, %c0_16] : memref<32x32xf32, #tpu.memory_space<vmem>>, vector<32x32xf32>
    %30 = vector.extract_strided_slice %28 {offsets = [0, 0], sizes = [10, 8], strides = [1, 1]} : vector<10x96xf32> to vector<10x8xf32>
    %cst_17 = arith.constant 0.353553385 : f32
    %31 = vector.broadcast %cst_17 : f32 to vector<10x8xf32>
    %32 = arith.mulf %30, %31 : vector<10x8xf32>
    %33 = vector.extract_strided_slice %28 {offsets = [0, 32], sizes = [10, 8], strides = [1, 1]} : vector<10x96xf32> to vector<10x8xf32>
    %34 = vector.extract_strided_slice %28 {offsets = [0, 64], sizes = [10, 8], strides = [1, 1]} : vector<10x96xf32> to vector<10x8xf32>
    %cst_18 = arith.constant dense<0.000000e+00> : vector<10x10xf32>
    %35 = tpu.matmul %32, %33, %cst_18 {dimension_numbers = #tpu.dot_dimension_numbers<[1], [1], [0], [0], [0, 0, 1, 0], [], []>} : vector<10x8xf32>, vector<10x8xf32>, vector<10x10xf32> -> vector<10x10xf32>
    %cst_19 = arith.constant dense<0xFF800000> : vector<10xf32>
    %36 = vector.multi_reduction <maximumf>, %35, %cst_19 [1] : vector<10x10xf32> to vector<10xf32>
    %37 = vector.shape_cast %36 : vector<10xf32> to vector<10x1xf32>
    %38 = vector.broadcast %37 : vector<10x1xf32> to vector<10x10xf32>
    %39 = arith.subf %35, %38 : vector<10x10xf32>
    %40 = math.exp %39 : vector<10x10xf32>
    %cst_20 = arith.constant dense<0.000000e+00> : vector<10xf32>
    %41 = vector.multi_reduction <add>, %40, %cst_20 [1] : vector<10x10xf32> to vector<10xf32>
    %42 = vector.shape_cast %41 : vector<10xf32> to vector<10x1xf32>
    %43 = tpu.reciprocal %42 : vector<10x1xf32> -> vector<10x1xf32>
    %44 = vector.broadcast %43 : vector<10x1xf32> to vector<10x10xf32>
    %45 = arith.mulf %40, %44 : vector<10x10xf32>
    %cst_21 = arith.constant dense<0.000000e+00> : vector<10x8xf32>
    %46 = tpu.matmul %45, %34, %cst_21 {dimension_numbers = #tpu.dot_dimension_numbers<[1], [0], [0], [1], [0, 0, 1, 1], [], []>} : vector<10x10xf32>, vector<10x8xf32>, vector<10x8xf32> -> vector<10x8xf32>
    %47 = vector.extract_strided_slice %29 {offsets = [0, 0], sizes = [8, 32], strides = [1, 1]} : vector<32x32xf32> to vector<8x32xf32>
    %cst_22 = arith.constant dense<0.000000e+00> : vector<10x32xf32>
    %48 = tpu.matmul %46, %47, %cst_22 {dimension_numbers = #tpu.dot_dimension_numbers<[1], [0], [0], [1], [0, 0, 1, 1], [], []>} : vector<10x8xf32>, vector<8x32xf32>, vector<10x32xf32> -> vector<10x32xf32>
    %49 = vector.extract_strided_slice %28 {offsets = [0, 8], sizes = [10, 8], strides = [1, 1]} : vector<10x96xf32> to vector<10x8xf32>
    %cst_23 = arith.constant 0.353553385 : f32
    %50 = vector.broadcast %cst_23 : f32 to vector<10x8xf32>
    %51 = arith.mulf %49, %50 : vector<10x8xf32>
    %52 = vector.extract_strided_slice %28 {offsets = [0, 40], sizes = [10, 8], strides = [1, 1]} : vector<10x96xf32> to vector<10x8xf32>
    %53 = vector.extract_strided_slice %28 {offsets = [0, 72], sizes = [10, 8], strides = [1, 1]} : vector<10x96xf32> to vector<10x8xf32>
    %cst_24 = arith.constant dense<0.000000e+00> : vector<10x10xf32>
    %54 = tpu.matmul %51, %52, %cst_24 {dimension_numbers = #tpu.dot_dimension_numbers<[1], [1], [0], [0], [0, 0, 1, 0], [], []>} : vector<10x8xf32>, vector<10x8xf32>, vector<10x10xf32> -> vector<10x10xf32>
    %cst_25 = arith.constant dense<0xFF800000> : vector<10xf32>
    %55 = vector.multi_reduction <maximumf>, %54, %cst_25 [1] : vector<10x10xf32> to vector<10xf32>
    %56 = vector.shape_cast %55 : vector<10xf32> to vector<10x1xf32>
    %57 = vector.broadcast %56 : vector<10x1xf32> to vector<10x10xf32>
    %58 = arith.subf %54, %57 : vector<10x10xf32>
    %59 = math.exp %58 : vector<10x10xf32>
    %cst_26 = arith.constant dense<0.000000e+00> : vector<10xf32>
    %60 = vector.multi_reduction <add>, %59, %cst_26 [1] : vector<10x10xf32> to vector<10xf32>
    %61 = vector.shape_cast %60 : vector<10xf32> to vector<10x1xf32>
    %62 = tpu.reciprocal %61 : vector<10x1xf32> -> vector<10x1xf32>
    %63 = vector.broadcast %62 : vector<10x1xf32> to vector<10x10xf32>
    %64 = arith.mulf %59, %63 : vector<10x10xf32>
    %cst_27 = arith.constant dense<0.000000e+00> : vector<10x8xf32>
    %65 = tpu.matmul %64, %53, %cst_27 {dimension_numbers = #tpu.dot_dimension_numbers<[1], [0], [0], [1], [0, 0, 1, 1], [], []>} : vector<10x10xf32>, vector<10x8xf32>, vector<10x8xf32> -> vector<10x8xf32>
    %66 = vector.extract_strided_slice %29 {offsets = [8, 0], sizes = [8, 32], strides = [1, 1]} : vector<32x32xf32> to vector<8x32xf32>
    %cst_28 = arith.constant dense<0.000000e+00> : vector<10x32xf32>
    %67 = tpu.matmul %65, %66, %cst_28 {dimension_numbers = #tpu.dot_dimension_numbers<[1], [0], [0], [1], [0, 0, 1, 1], [], []>} : vector<10x8xf32>, vector<8x32xf32>, vector<10x32xf32> -> vector<10x32xf32>
    %68 = arith.addf %48, %67 : vector<10x32xf32>
    %69 = vector.extract_strided_slice %28 {offsets = [0, 16], sizes = [10, 8], strides = [1, 1]} : vector<10x96xf32> to vector<10x8xf32>
    %cst_29 = arith.constant 0.353553385 : f32
    %70 = vector.broadcast %cst_29 : f32 to vector<10x8xf32>
    %71 = arith.mulf %69, %70 : vector<10x8xf32>
    %72 = vector.extract_strided_slice %28 {offsets = [0, 48], sizes = [10, 8], strides = [1, 1]} : vector<10x96xf32> to vector<10x8xf32>
    %73 = vector.extract_strided_slice %28 {offsets = [0, 80], sizes = [10, 8], strides = [1, 1]} : vector<10x96xf32> to vector<10x8xf32>
    %cst_30 = arith.constant dense<0.000000e+00> : vector<10x10xf32>
    %74 = tpu.matmul %71, %72, %cst_30 {dimension_numbers = #tpu.dot_dimension_numbers<[1], [1], [0], [0], [0, 0, 1, 0], [], []>} : vector<10x8xf32>, vector<10x8xf32>, vector<10x10xf32> -> vector<10x10xf32>
    %cst_31 = arith.constant dense<0xFF800000> : vector<10xf32>
    %75 = vector.multi_reduction <maximumf>, %74, %cst_31 [1] : vector<10x10xf32> to vector<10xf32>
    %76 = vector.shape_cast %75 : vector<10xf32> to vector<10x1xf32>
    %77 = vector.broadcast %76 : vector<10x1xf32> to vector<10x10xf32>
    %78 = arith.subf %74, %77 : vector<10x10xf32>
    %79 = math.exp %78 : vector<10x10xf32>
    %cst_32 = arith.constant dense<0.000000e+00> : vector<10xf32>
    %80 = vector.multi_reduction <add>, %79, %cst_32 [1] : vector<10x10xf32> to vector<10xf32>
    %81 = vector.shape_cast %80 : vector<10xf32> to vector<10x1xf32>
    %82 = tpu.reciprocal %81 : vector<10x1xf32> -> vector<10x1xf32>
    %83 = vector.broadcast %82 : vector<10x1xf32> to vector<10x10xf32>
    %84 = arith.mulf %79, %83 : vector<10x10xf32>
    %cst_33 = arith.constant dense<0.000000e+00> : vector<10x8xf32>
    %85 = tpu.matmul %84, %73, %cst_33 {dimension_numbers = #tpu.dot_dimension_numbers<[1], [0], [0], [1], [0, 0, 1, 1], [], []>} : vector<10x10xf32>, vector<10x8xf32>, vector<10x8xf32> -> vector<10x8xf32>
    %86 = vector.extract_strided_slice %29 {offsets = [16, 0], sizes = [8, 32], strides = [1, 1]} : vector<32x32xf32> to vector<8x32xf32>
    %cst_34 = arith.constant dense<0.000000e+00> : vector<10x32xf32>
    %87 = tpu.matmul %85, %86, %cst_34 {dimension_numbers = #tpu.dot_dimension_numbers<[1], [0], [0], [1], [0, 0, 1, 1], [], []>} : vector<10x8xf32>, vector<8x32xf32>, vector<10x32xf32> -> vector<10x32xf32>
    %88 = arith.addf %68, %87 : vector<10x32xf32>
    %89 = vector.extract_strided_slice %28 {offsets = [0, 24], sizes = [10, 8], strides = [1, 1]} : vector<10x96xf32> to vector<10x8xf32>
    %cst_35 = arith.constant 0.353553385 : f32
    %90 = vector.broadcast %cst_35 : f32 to vector<10x8xf32>
    %91 = arith.mulf %89, %90 : vector<10x8xf32>
    %92 = vector.extract_strided_slice %28 {offsets = [0, 56], sizes = [10, 8], strides = [1, 1]} : vector<10x96xf32> to vector<10x8xf32>
    %93 = vector.extract_strided_slice %28 {offsets = [0, 88], sizes = [10, 8], strides = [1, 1]} : vector<10x96xf32> to vector<10x8xf32>
    %cst_36 = arith.constant dense<0.000000e+00> : vector<10x10xf32>
    %94 = tpu.matmul %91, %92, %cst_36 {dimension_numbers = #tpu.dot_dimension_numbers<[1], [1], [0], [0], [0, 0, 1, 0], [], []>} : vector<10x8xf32>, vector<10x8xf32>, vector<10x10xf32> -> vector<10x10xf32>
    %cst_37 = arith.constant dense<0xFF800000> : vector<10xf32>
    %95 = vector.multi_reduction <maximumf>, %94, %cst_37 [1] : vector<10x10xf32> to vector<10xf32>
    %96 = vector.shape_cast %95 : vector<10xf32> to vector<10x1xf32>
    %97 = vector.broadcast %96 : vector<10x1xf32> to vector<10x10xf32>
    %98 = arith.subf %94, %97 : vector<10x10xf32>
    %99 = math.exp %98 : vector<10x10xf32>
    %cst_38 = arith.constant dense<0.000000e+00> : vector<10xf32>
    %100 = vector.multi_reduction <add>, %99, %cst_38 [1] : vector<10x10xf32> to vector<10xf32>
    %101 = vector.shape_cast %100 : vector<10xf32> to vector<10x1xf32>
    %102 = tpu.reciprocal %101 : vector<10x1xf32> -> vector<10x1xf32>
    %103 = vector.broadcast %102 : vector<10x1xf32> to vector<10x10xf32>
    %104 = arith.mulf %99, %103 : vector<10x10xf32>
    %cst_39 = arith.constant dense<0.000000e+00> : vector<10x8xf32>
    %105 = tpu.matmul %104, %93, %cst_39 {dimension_numbers = #tpu.dot_dimension_numbers<[1], [0], [0], [1], [0, 0, 1, 1], [], []>} : vector<10x10xf32>, vector<10x8xf32>, vector<10x8xf32> -> vector<10x8xf32>
    %106 = vector.extract_strided_slice %29 {offsets = [24, 0], sizes = [8, 32], strides = [1, 1]} : vector<32x32xf32> to vector<8x32xf32>
    %cst_40 = arith.constant dense<0.000000e+00> : vector<10x32xf32>
    %107 = tpu.matmul %105, %106, %cst_40 {dimension_numbers = #tpu.dot_dimension_numbers<[1], [0], [0], [1], [0, 0, 1, 1], [], []>} : vector<10x8xf32>, vector<8x32xf32>, vector<10x32xf32> -> vector<10x32xf32>
    %108 = arith.addf %88, %107 : vector<10x32xf32>
    %109 = arith.addf %1, %108 : vector<10x32xf32>
    %c0_41 = arith.constant 0 : index
    %c0_42 = arith.constant 0 : index
    %110 = vector.load %arg7[%c0_41, %c0_42] : memref<1x32xf32, #tpu.memory_space<vmem>>, vector<1x32xf32>
    %111 = vector.broadcast %110 : vector<1x32xf32> to vector<10x32xf32>
    %112 = arith.addf %109, %111 : vector<10x32xf32>
    %c0_43 = arith.constant 0 : index
    %c0_44 = arith.constant 0 : index
    %113 = vector.load %arg8[%c0_43, %c0_44] : memref<1x32xf32, #tpu.memory_space<vmem>>, vector<1x32xf32>
    %c0_45 = arith.constant 0 : index
    %c0_46 = arith.constant 0 : index
    %114 = vector.load %arg9[%c0_45, %c0_46] : memref<1x32xf32, #tpu.memory_space<vmem>>, vector<1x32xf32>
    %cst_47 = arith.constant dense<0.000000e+00> : vector<10xf32>
    %115 = vector.multi_reduction <add>, %112, %cst_47 [1] : vector<10x32xf32> to vector<10xf32>
    %116 = vector.shape_cast %115 : vector<10xf32> to vector<10x1xf32>
    %cst_48 = arith.constant 3.200000e+01 : f32
    %117 = vector.broadcast %cst_48 : f32 to vector<10x1xf32>
    %118 = arith.divf %116, %117 : vector<10x1xf32>
    %119 = vector.broadcast %118 : vector<10x1xf32> to vector<10x32xf32>
    %120 = arith.subf %112, %119 : vector<10x32xf32>
    %121 = arith.mulf %120, %120 : vector<10x32xf32>
    %cst_49 = arith.constant dense<0.000000e+00> : vector<10xf32>
    %122 = vector.multi_reduction <add>, %121, %cst_49 [1] : vector<10x32xf32> to vector<10xf32>
    %123 = vector.shape_cast %122 : vector<10xf32> to vector<10x1xf32>
    %cst_50 = arith.constant 3.200000e+01 : f32
    %124 = vector.broadcast %cst_50 : f32 to vector<10x1xf32>
    %125 = arith.divf %123, %124 : vector<10x1xf32>
    %cst_51 = arith.constant 9.99999974E-6 : f32
    %126 = vector.broadcast %cst_51 : f32 to vector<10x1xf32>
    %127 = arith.addf %125, %126 : vector<10x1xf32>
    %128 = math.rsqrt %127 : vector<10x1xf32>
    %129 = vector.broadcast %128 : vector<10x1xf32> to vector<10x32xf32>
    %130 = arith.mulf %120, %129 : vector<10x32xf32>
    %131 = vector.broadcast %113 : vector<1x32xf32> to vector<10x32xf32>
    %132 = arith.mulf %130, %131 : vector<10x32xf32>
    %133 = vector.broadcast %114 : vector<1x32xf32> to vector<10x32xf32>
    %134 = arith.addf %132, %133 : vector<10x32xf32>
    %c0_52 = arith.constant 0 : index
    %c0_53 = arith.constant 0 : index
    %135 = vector.load %arg10[%c0_52, %c0_53] : memref<32x128xf32, #tpu.memory_space<vmem>>, vector<32x128xf32>
    %cst_54 = arith.constant dense<0.000000e+00> : vector<10x128xf32>
    %136 = tpu.matmul %134, %135, %cst_54 {dimension_numbers = #tpu.dot_dimension_numbers<[1], [0], [0], [1], [0, 0, 1, 1], [], []>} : vector<10x32xf32>, vector<32x128xf32>, vector<10x128xf32> -> vector<10x128xf32>
    %c0_55 = arith.constant 0 : index
    %c0_56 = arith.constant 0 : index
    %137 = vector.load %arg11[%c0_55, %c0_56] : memref<1x128xf32, #tpu.memory_space<vmem>>, vector<1x128xf32>
    %138 = vector.broadcast %137 : vector<1x128xf32> to vector<10x128xf32>
    %139 = arith.addf %136, %138 : vector<10x128xf32>
    %cst_57 = arith.constant 5.000000e-01 : f32
    %140 = vector.broadcast %cst_57 : f32 to vector<10x128xf32>
    %141 = arith.mulf %140, %139 : vector<10x128xf32>
    %cst_58 = arith.constant 0.707106769 : f32
    %142 = vector.broadcast %cst_58 : f32 to vector<10x128xf32>
    %143 = arith.mulf %139, %142 : vector<10x128xf32>
    %144 = math.absf %143 : vector<10x128xf32>
    %cst_59 = arith.constant 0.327591091 : f32
    %145 = vector.broadcast %cst_59 : f32 to vector<10x128xf32>
    %146 = arith.mulf %145, %144 : vector<10x128xf32>
    %cst_60 = arith.constant 1.000000e+00 : f32
    %147 = vector.broadcast %cst_60 : f32 to vector<10x128xf32>
    %148 = arith.addf %147, %146 : vector<10x128xf32>
    %cst_61 = arith.constant 1.000000e+00 : f32
    %149 = vector.broadcast %cst_61 : f32 to vector<10x128xf32>
    %150 = arith.divf %149, %148 : vector<10x128xf32>
    %cst_62 = arith.constant 1.06140542 : f32
    %151 = vector.broadcast %cst_62 : f32 to vector<10x128xf32>
    %152 = arith.mulf %150, %151 : vector<10x128xf32>
    %cst_63 = arith.constant -1.45315206 : f32
    %153 = vector.broadcast %cst_63 : f32 to vector<10x128xf32>
    %154 = arith.addf %153, %152 : vector<10x128xf32>
    %155 = arith.mulf %150, %154 : vector<10x128xf32>
    %cst_64 = arith.constant 1.42141378 : f32
    %156 = vector.broadcast %cst_64 : f32 to vector<10x128xf32>
    %157 = arith.addf %156, %155 : vector<10x128xf32>
    %158 = arith.mulf %150, %157 : vector<10x128xf32>
    %cst_65 = arith.constant -0.284496725 : f32
    %159 = vector.broadcast %cst_65 : f32 to vector<10x128xf32>
    %160 = arith.addf %159, %158 : vector<10x128xf32>
    %161 = arith.mulf %150, %160 : vector<10x128xf32>
    %cst_66 = arith.constant 0.254829586 : f32
    %162 = vector.broadcast %cst_66 : f32 to vector<10x128xf32>
    %163 = arith.addf %162, %161 : vector<10x128xf32>
    %164 = arith.mulf %150, %163 : vector<10x128xf32>
    %cst_67 = arith.constant 0.000000e+00 : f32
    %165 = vector.broadcast %cst_67 : f32 to vector<10x128xf32>
    %166 = arith.subf %165, %144 : vector<10x128xf32>
    %167 = arith.mulf %166, %144 : vector<10x128xf32>
    %168 = math.exp %167 : vector<10x128xf32>
    %169 = arith.mulf %164, %168 : vector<10x128xf32>
    %cst_68 = arith.constant 1.000000e+00 : f32
    %170 = vector.broadcast %cst_68 : f32 to vector<10x128xf32>
    %171 = arith.subf %170, %169 : vector<10x128xf32>
    %cst_69 = arith.constant 0.000000e+00 : f32
    %172 = vector.broadcast %cst_69 : f32 to vector<10x128xf32>
    %173 = arith.cmpf olt, %143, %172 : vector<10x128xf32>
    %cst_70 = arith.constant 0.000000e+00 : f32
    %174 = vector.broadcast %cst_70 : f32 to vector<10x128xf32>
    %175 = arith.subf %174, %171 : vector<10x128xf32>
    %176 = arith.select %173, %175, %171 : vector<10x128xi1>, vector<10x128xf32>
    %cst_71 = arith.constant 1.000000e+00 : f32
    %177 = vector.broadcast %cst_71 : f32 to vector<10x128xf32>
    %178 = arith.addf %177, %176 : vector<10x128xf32>
    %179 = arith.mulf %141, %178 : vector<10x128xf32>
    %c0_72 = arith.constant 0 : index
    %c0_73 = arith.constant 0 : index
    %180 = vector.load %arg12[%c0_72, %c0_73] : memref<128x32xf32, #tpu.memory_space<vmem>>, vector<128x32xf32>
    %cst_74 = arith.constant dense<0.000000e+00> : vector<10x32xf32>
    %181 = tpu.matmul %179, %180, %cst_74 {dimension_numbers = #tpu.dot_dimension_numbers<[1], [0], [0], [1], [0, 0, 1, 1], [], []>} : vector<10x128xf32>, vector<128x32xf32>, vector<10x32xf32> -> vector<10x32xf32>
    %c0_75 = arith.constant 0 : index
    %c0_76 = arith.constant 0 : index
    %182 = vector.load %arg13[%c0_75, %c0_76] : memref<1x32xf32, #tpu.memory_space<vmem>>, vector<1x32xf32>
    %183 = vector.broadcast %182 : vector<1x32xf32> to vector<10x32xf32>
    %184 = arith.addf %181, %183 : vector<10x32xf32>
    %185 = arith.addf %112, %184 : vector<10x32xf32>
    %c0_77 = arith.constant 0 : index
    %c0_78 = arith.constant 0 : index
    %c0_79 = arith.constant 0 : index
    %186 = vector.load %arg14[%c0_77, %c0_78, %c0_79] : memref<1x10x32xf32, #tpu.memory_space<vmem>>, vector<1x10x32xf32>
    %187 = vector.shape_cast %186 : vector<1x10x32xf32> to vector<10x32xf32>
    %188 = vector.shape_cast %185 : vector<10x32xf32> to vector<1x10x32xf32>
    tpu.vector_store %arg14[%c0_77, %c0_78, %c0_79], %188 {strides = array<i32>} : memref<1x10x32xf32, #tpu.memory_space<vmem>>, vector<1x10x32xf32>,
    return
  }
  func.func @transform_0(%arg0: i32) -> (i32, i32, i32) {
    %c0_i32 = arith.constant 0 : i32
    %c0_i32_0 = arith.constant 0 : i32
    %c0_i32_1 = arith.constant 0 : i32
    return %arg0, %c0_i32, %c0_i32_0 : i32, i32, i32
  }
  func.func @transform_1(%arg0: i32) -> (i32, i32) {
    %c0_i32 = arith.constant 0 : i32
    %c0_i32_0 = arith.constant 0 : i32
    %c0_i32_1 = arith.constant 0 : i32
    return %c0_i32, %c0_i32_0 : i32, i32
  }
  func.func @transform_2(%arg0: i32) -> (i32, i32) {
    %c0_i32 = arith.constant 0 : i32
    %c0_i32_0 = arith.constant 0 : i32
    %c0_i32_1 = arith.constant 0 : i32
    return %c0_i32, %c0_i32_0 : i32, i32
  }
  func.func @transform_3(%arg0: i32) -> (i32, i32) {
    %c0_i32 = arith.constant 0 : i32
    %c0_i32_0 = arith.constant 0 : i32
    %c0_i32_1 = arith.constant 0 : i32
    return %c0_i32, %c0_i32_0 : i32, i32
  }
  func.func @transform_4(%arg0: i32) -> (i32, i32) {
    %c0_i32 = arith.constant 0 : i32
    %c0_i32_0 = arith.constant 0 : i32
    %c0_i32_1 = arith.constant 0 : i32
    return %c0_i32, %c0_i32_0 : i32, i32
  }
  func.func @transform_5(%arg0: i32) -> (i32, i32) {
    %c0_i32 = arith.constant 0 : i32
    %c0_i32_0 = arith.constant 0 : i32
    %c0_i32_1 = arith.constant 0 : i32
    return %c0_i32, %c0_i32_0 : i32, i32
  }
  func.func @transform_6(%arg0: i32) -> (i32, i32) {
    %c0_i32 = arith.constant 0 : i32
    %c0_i32_0 = arith.constant 0 : i32
    %c0_i32_1 = arith.constant 0 : i32
    return %c0_i32, %c0_i32_0 : i32, i32
  }
  func.func @transform_7(%arg0: i32) -> (i32, i32) {
    %c0_i32 = arith.constant 0 : i32
    %c0_i32_0 = arith.constant 0 : i32
    %c0_i32_1 = arith.constant 0 : i32
    return %c0_i32, %c0_i32_0 : i32, i32
  }
  func.func @transform_8(%arg0: i32) -> (i32, i32) {
    %c0_i32 = arith.constant 0 : i32
    %c0_i32_0 = arith.constant 0 : i32
    %c0_i32_1 = arith.constant 0 : i32
    return %c0_i32, %c0_i32_0 : i32, i32
  }
  func.func @transform_9(%arg0: i32) -> (i32, i32) {
    %c0_i32 = arith.constant 0 : i32
    %c0_i32_0 = arith.constant 0 : i32
    %c0_i32_1 = arith.constant 0 : i32
    return %c0_i32, %c0_i32_0 : i32, i32
  }
  func.func @transform_10(%arg0: i32) -> (i32, i32) {
    %c0_i32 = arith.constant 0 : i32
    %c0_i32_0 = arith.constant 0 : i32
    %c0_i32_1 = arith.constant 0 : i32
    return %c0_i32, %c0_i32_0 : i32, i32
  }
  func.func @transform_11(%arg0: i32) -> (i32, i32) {
    %c0_i32 = arith.constant 0 : i32
    %c0_i32_0 = arith.constant 0 : i32
    %c0_i32_1 = arith.constant 0 : i32
    return %c0_i32, %c0_i32_0 : i32, i32
  }
  func.func @transform_12(%arg0: i32) -> (i32, i32) {
    %c0_i32 = arith.constant 0 : i32
    %c0_i32_0 = arith.constant 0 : i32
    %c0_i32_1 = arith.constant 0 : i32
    return %c0_i32, %c0_i32_0 : i32, i32
  }
  func.func @transform_13(%arg0: i32) -> (i32, i32, i32) {
    %c0_i32 = arith.constant 0 : i32
    %c0_i32_0 = arith.constant 0 : i32
    %c0_i32_1 = arith.constant 0 : i32
    return %arg0, %c0_i32, %c0_i32_0 : i32, i32, i32
  }
}

module attributes {stable_mosaic.version = 11 : i64} {
  func.func @_head_kernel(%arg0: i32, %arg1: memref<2x32xf32, #tpu.memory_space<vmem>>, %arg2: memref<32x32xf32, #tpu.memory_space<vmem>>, %arg3: memref<1x32xf32, #tpu.memory_space<vmem>>, %arg4: memref<32x8xf32, #tpu.memory_space<vmem>>, %arg5: memref<1x8xf32, #tpu.memory_space<vmem>>, %arg6: memref<2x8xf32, #tpu.memory_space<vmem>>) attributes {dimension_semantics = [#tpu.dimension_semantics<arbitrary>], iteration_bounds = array<i64: 1>, scalar_prefetch = 0 : i64, scratch_operands = 0 : i64, tpu.core_type = #tpu.core_type<tc>, window_params = [{pipeline_mode = #tpu.pipeline_mode<synchronous>, transform_indices = @transform_0, window_bounds = array<i64: 2, 32>}, {pipeline_mode = #tpu.pipeline_mode<synchronous>, transform_indices = @transform_1, window_bounds = array<i64: 32, 32>}, {pipeline_mode = #tpu.pipeline_mode<synchronous>, transform_indices = @transform_2, window_bounds = array<i64: 1, 32>}, {pipeline_mode = #tpu.pipeline_mode<synchronous>, transform_indices = @transform_3, window_bounds = array<i64: 32, 8>}, {pipeline_mode = #tpu.pipeline_mode<synchronous>, transform_indices = @transform_4, window_bounds = array<i64: 1, 8>}, {pipeline_mode = #tpu.pipeline_mode<synchronous>, transform_indices = @transform_5, window_bounds = array<i64: 2, 8>}]} {
    %c0 = arith.constant 0 : index
    %c0_0 = arith.constant 0 : index
    %0 = vector.load %arg1[%c0, %c0_0] : memref<2x32xf32, #tpu.memory_space<vmem>>, vector<2x32xf32>
    %c0_1 = arith.constant 0 : index
    %c0_2 = arith.constant 0 : index
    %1 = vector.load %arg2[%c0_1, %c0_2] : memref<32x32xf32, #tpu.memory_space<vmem>>, vector<32x32xf32>
    %cst = arith.constant dense<0.000000e+00> : vector<2x32xf32>
    %2 = tpu.matmul %0, %1, %cst {dimension_numbers = #tpu.dot_dimension_numbers<[1], [0], [0], [1], [0, 0, 1, 1], [], []>} : vector<2x32xf32>, vector<32x32xf32>, vector<2x32xf32> -> vector<2x32xf32>
    %c0_3 = arith.constant 0 : index
    %c0_4 = arith.constant 0 : index
    %3 = vector.load %arg3[%c0_3, %c0_4] : memref<1x32xf32, #tpu.memory_space<vmem>>, vector<1x32xf32>
    %4 = vector.broadcast %3 : vector<1x32xf32> to vector<2x32xf32>
    %5 = arith.addf %2, %4 : vector<2x32xf32>
    %cst_5 = arith.constant 5.000000e-01 : f32
    %6 = vector.broadcast %cst_5 : f32 to vector<2x32xf32>
    %7 = arith.mulf %6, %5 : vector<2x32xf32>
    %cst_6 = arith.constant 0.707106769 : f32
    %8 = vector.broadcast %cst_6 : f32 to vector<2x32xf32>
    %9 = arith.mulf %5, %8 : vector<2x32xf32>
    %10 = math.absf %9 : vector<2x32xf32>
    %cst_7 = arith.constant 0.327591091 : f32
    %11 = vector.broadcast %cst_7 : f32 to vector<2x32xf32>
    %12 = arith.mulf %11, %10 : vector<2x32xf32>
    %cst_8 = arith.constant 1.000000e+00 : f32
    %13 = vector.broadcast %cst_8 : f32 to vector<2x32xf32>
    %14 = arith.addf %13, %12 : vector<2x32xf32>
    %cst_9 = arith.constant 1.000000e+00 : f32
    %15 = vector.broadcast %cst_9 : f32 to vector<2x32xf32>
    %16 = arith.divf %15, %14 : vector<2x32xf32>
    %cst_10 = arith.constant 1.06140542 : f32
    %17 = vector.broadcast %cst_10 : f32 to vector<2x32xf32>
    %18 = arith.mulf %16, %17 : vector<2x32xf32>
    %cst_11 = arith.constant -1.45315206 : f32
    %19 = vector.broadcast %cst_11 : f32 to vector<2x32xf32>
    %20 = arith.addf %19, %18 : vector<2x32xf32>
    %21 = arith.mulf %16, %20 : vector<2x32xf32>
    %cst_12 = arith.constant 1.42141378 : f32
    %22 = vector.broadcast %cst_12 : f32 to vector<2x32xf32>
    %23 = arith.addf %22, %21 : vector<2x32xf32>
    %24 = arith.mulf %16, %23 : vector<2x32xf32>
    %cst_13 = arith.constant -0.284496725 : f32
    %25 = vector.broadcast %cst_13 : f32 to vector<2x32xf32>
    %26 = arith.addf %25, %24 : vector<2x32xf32>
    %27 = arith.mulf %16, %26 : vector<2x32xf32>
    %cst_14 = arith.constant 0.254829586 : f32
    %28 = vector.broadcast %cst_14 : f32 to vector<2x32xf32>
    %29 = arith.addf %28, %27 : vector<2x32xf32>
    %30 = arith.mulf %16, %29 : vector<2x32xf32>
    %cst_15 = arith.constant 0.000000e+00 : f32
    %31 = vector.broadcast %cst_15 : f32 to vector<2x32xf32>
    %32 = arith.subf %31, %10 : vector<2x32xf32>
    %33 = arith.mulf %32, %10 : vector<2x32xf32>
    %34 = math.exp %33 : vector<2x32xf32>
    %35 = arith.mulf %30, %34 : vector<2x32xf32>
    %cst_16 = arith.constant 1.000000e+00 : f32
    %36 = vector.broadcast %cst_16 : f32 to vector<2x32xf32>
    %37 = arith.subf %36, %35 : vector<2x32xf32>
    %cst_17 = arith.constant 0.000000e+00 : f32
    %38 = vector.broadcast %cst_17 : f32 to vector<2x32xf32>
    %39 = arith.cmpf olt, %9, %38 : vector<2x32xf32>
    %cst_18 = arith.constant 0.000000e+00 : f32
    %40 = vector.broadcast %cst_18 : f32 to vector<2x32xf32>
    %41 = arith.subf %40, %37 : vector<2x32xf32>
    %42 = arith.select %39, %41, %37 : vector<2x32xi1>, vector<2x32xf32>
    %cst_19 = arith.constant 1.000000e+00 : f32
    %43 = vector.broadcast %cst_19 : f32 to vector<2x32xf32>
    %44 = arith.addf %43, %42 : vector<2x32xf32>
    %45 = arith.mulf %7, %44 : vector<2x32xf32>
    %c0_20 = arith.constant 0 : index
    %c0_21 = arith.constant 0 : index
    %46 = vector.load %arg4[%c0_20, %c0_21] : memref<32x8xf32, #tpu.memory_space<vmem>>, vector<32x8xf32>
    %cst_22 = arith.constant dense<0.000000e+00> : vector<2x8xf32>
    %47 = tpu.matmul %45, %46, %cst_22 {dimension_numbers = #tpu.dot_dimension_numbers<[1], [0], [0], [1], [0, 0, 1, 1], [], []>} : vector<2x32xf32>, vector<32x8xf32>, vector<2x8xf32> -> vector<2x8xf32>
    %c0_23 = arith.constant 0 : index
    %c0_24 = arith.constant 0 : index
    %48 = vector.load %arg5[%c0_23, %c0_24] : memref<1x8xf32, #tpu.memory_space<vmem>>, vector<1x8xf32>
    %49 = vector.broadcast %48 : vector<1x8xf32> to vector<2x8xf32>
    %50 = arith.addf %47, %49 : vector<2x8xf32>
    %c0_25 = arith.constant 0 : index
    %c0_26 = arith.constant 0 : index
    %51 = vector.load %arg6[%c0_25, %c0_26] : memref<2x8xf32, #tpu.memory_space<vmem>>, vector<2x8xf32>
    tpu.vector_store %arg6[%c0_25, %c0_26], %50 {strides = array<i32>} : memref<2x8xf32, #tpu.memory_space<vmem>>, vector<2x8xf32>,
    return
  }
  func.func @transform_0(%arg0: i32) -> (i32, i32) {
    %c0_i32 = arith.constant 0 : i32
    %c0_i32_0 = arith.constant 0 : i32
    %c0_i32_1 = arith.constant 0 : i32
    return %c0_i32, %c0_i32_0 : i32, i32
  }
  func.func @transform_1(%arg0: i32) -> (i32, i32) {
    %c0_i32 = arith.constant 0 : i32
    %c0_i32_0 = arith.constant 0 : i32
    %c0_i32_1 = arith.constant 0 : i32
    return %c0_i32, %c0_i32_0 : i32, i32
  }
  func.func @transform_2(%arg0: i32) -> (i32, i32) {
    %c0_i32 = arith.constant 0 : i32
    %c0_i32_0 = arith.constant 0 : i32
    %c0_i32_1 = arith.constant 0 : i32
    return %c0_i32, %c0_i32_0 : i32, i32
  }
  func.func @transform_3(%arg0: i32) -> (i32, i32) {
    %c0_i32 = arith.constant 0 : i32
    %c0_i32_0 = arith.constant 0 : i32
    %c0_i32_1 = arith.constant 0 : i32
    return %c0_i32, %c0_i32_0 : i32, i32
  }
  func.func @transform_4(%arg0: i32) -> (i32, i32) {
    %c0_i32 = arith.constant 0 : i32
    %c0_i32_0 = arith.constant 0 : i32
    %c0_i32_1 = arith.constant 0 : i32
    return %c0_i32, %c0_i32_0 : i32, i32
  }
  func.func @transform_5(%arg0: i32) -> (i32, i32) {
    %c0_i32 = arith.constant 0 : i32
    %c0_i32_0 = arith.constant 0 : i32
    %c0_i32_1 = arith.constant 0 : i32
    return %c0_i32, %c0_i32_0 : i32, i32
  }
}

</mosaic_0001>

<bundles_post_ra>
// kernel: forward.5
= control target key start
LH: loop header
LB: loop body
LE: loop exit
PB: predicated region body
PF: predicated region fallthrough
CT: control target
= control target key end

     0   :  { %v314_v3 = vmov 0.0|0.0   ;;  %vm315_vm0 = vmmov 0   ;;  %v316_v6 = vmov 0.0   ;;  %s395_s0 = inlined_call_operand.vmem [shape: f32[2,32], index: 0, kind: input, shape index: {}]   ;;  %s396_s1 = inlined_call_operand.vmem [shape: f32[32,32], index: 1, kind: input, shape index: {}]   ;;  %s397_s2 = inlined_call_operand.vmem [shape: f32[1,32], index: 2, kind: input, shape index: {}]   ;;  %s398_s3 = inlined_call_operand.vmem [shape: f32[32,8], index: 3, kind: input, shape index: {}]   ;;  %s399_s4 = inlined_call_operand.vmem [shape: f32[1,8], index: 4, kind: input, shape index: {}]   ;;  %s400_s5 = inlined_call_operand.hbm [shape: f32[2,8], index: 5, kind: output, shape index: {}]  }
   0x1   :  { %v22_v0 = vld [vmem:[%s396_s1] sm:$0xff]  ;;  %v23_v1 = vld [vmem:[%s396_s1 + $0x8] sm:$0xff]  ;;  %v24_v2 = vld [vmem:[%s396_s1 + $0x10] sm:$0xff]  ;;  %270 = vmatprep.subr.bf16.mxu0 %v314_v3  ;;  %256 = vmatprep.mubr.msk.f32.mxu0 %vm315_vm0, %v316_v6 }
   0x2   :  { %v271_v4 = vpack.c.bf16 %v23_v1, %v22_v0  ;;  %v25_v5 = vld [vmem:[%s396_s1 + $0x18] sm:$0xff]  ;;  %276 = vmatprep.subr.bf16.mxu1 %v314_v3  ;;  %267 = vmatprep.mubr.msk.f32.mxu1 %vm315_vm0, %v316_v6 }
   0x3   :  { %10 = vsyncpa [#allocation3], 0  ;;  %v274_v7 = vpack.c.bf16 %v25_v5, %v24_v2  ;;  %v21_v8 = vld [vmem:[%s395_s0] sm:$0x3]  ;;  %vm33_vm1 = vcmask 261120   ;;  %v135_v10 = vld [vmem:[%s398_s3 + $0x8] sm:$0xff] }
   0x4   :  { %272 = vmatpush3.bf16.msra.mxu0 %v271_v4  ;;  %v134_v9 = vld [vmem:[%s398_s3] sm:$0xff]  ;;  %v136_v12 = vld [vmem:[%s398_s3 + $0x10] sm:$0xff]  ;;  %v137_v13 = vld [vmem:[%s398_s3 + $0x18] sm:$0xff]  ;;  %s317_s11 = smov [#allocation2]   ;;  %vm218_vm3 = vcmask 58368  }
   0x5   :  { %273 = vmatprep.subr.bf16.mxu0 %v314_v3  ;;  %v277_v11 = vpack.c.bf16 %v135_v10, %v134_v9  ;;  %v280_v14 = vpack.c.bf16 %v137_v13, %v136_v12  ;;  %v234_v15 = vld [vmem:[%s397_s2] ss:$0 sm:$0xff]  ;;  %s226_s12 = sshll.u32 %s317_s11, 4  ;;  %s227_s12 = int_to_ptr.vmem [resolvable:$true] %s226_s12 }
   0x6   :  { %v236_v44 = vld [vmem:[%s399_s4] ss:$0 sm:$0xff]  ;;  %s290_s13 = scalar_lea.vmem %s227_s12, 32  ;;  %p295_p1 = scmp.lt.s32.totalorder %s227_s12, %s227_s12 }
   0x7   :  { %278 = vmatpush3.bf16.msra.mxu1 %v277_v11  ;;  %p291_p0 = scmp.ne.s32.totalorder %s227_s12, %s290_s13  ;;  %p296_p2 = scmp.lt.s32.totalorder %s290_s13, %s290_s13 }
   0x8   :  { %275 = vmatpush3.bf16.msra.mxu0 %v274_v7  ;;  %279 = vmatprep.subr.bf16.mxu1 %v314_v3 }
   0x9   :  { %p297_p3 = por %p296_p2, %p295_p1 }
   0xb   :  { %257 = vmatmul.mubr.msk.f32.vlgmr.msra.gmra.mrb[0].mxu0 %vm33_vm1, %v21_v8  ;;  %281 = vmatpush3.bf16.msra.mxu1 %v280_v14  ;;  %p298_p4 = pnand %p297_p3, %p291_p0 }
  0xde   :  { %v103_v16 = vpop.f32.mrb[0].mxu0 }
  0xdf   :  { %v104_v17 = vadd.f32 %v234_v15, %v103_v16  ;;  %v258_v18 = vpop.f32.mrb[1].mxu0 }
  0xe1   :  { %v108_v19 = vmul.f32 0.70710677, %v104_v17  ;;  %v107_v41 = vmul.f32 0.5, %v104_v17 }
  0xe3   :  { %v109_v20 = vand.u32 2147483647, %v108_v19  ;;  %vm129_vm2 = vcmp.lt.f32.partialorder %v108_v19, 0.0 }
  0xe5   :  { %v110_v21 = vmul.f32 0.3275911, %v109_v20  ;;  %v123_v23 = vsub.f32 0.0, %v109_v20 }
  0xe7   :  { %v111_v22 = vadd.f32 1.0, %v110_v21  ;;  %v124_v25 = vmul.f32 %v123_v23, %v109_v20 }
  0xe9   :  { %286 = vrcp.f32 %v111_v22  ;;  %v125_v28 = vmul.f32 1.442695, %v124_v25 }
  0xeb   :  { %288 = vpow2.f32 %v125_v28 }
  0xf3   :  { %v287_v24 = vpop.eup %286 }
  0xf4   :  { %v114_v26 = vmul.f32 1.0614054, %v287_v24 }
  0xf5   :  { %v289_v36 = vpop.eup %288 }
  0xf6   :  { %v115_v27 = vadd.f32 -1.4531521, %v114_v26 }
  0xf8   :  { %v116_v29 = vmul.f32 %v287_v24, %v115_v27 }
  0xfa   :  { %v117_v30 = vadd.f32 1.4214138, %v116_v29 }
  0xfc   :  { %v118_v31 = vmul.f32 %v287_v24, %v117_v30 }
  0xfe   :  { %v119_v32 = vadd.f32 -0.28449672, %v118_v31 }
 0x100   :  { %v120_v33 = vmul.f32 %v287_v24, %v119_v32 }
 0x102   :  { %v121_v34 = vadd.f32 0.2548296, %v120_v33 }
 0x104   :  { %v122_v35 = vmul.f32 %v287_v24, %v121_v34 }
 0x106   :  { %v127_v37 = vmul.f32 %v289_v36, %v122_v35 }
 0x108   :  { %v128_v38 = vsub.f32 1.0, %v127_v37 }
 0x10a   :  { %v130_v39 = vsub.f32 0.0, %v128_v38 }
 0x10c   :  { %v131_v40 = vsel %vm129_vm2, %v130_v39, %v128_v38 }
 0x10d   :  { %v132_v42 = vadd.f32 1.0, %v131_v40 }
 0x10f   :  { %v133_v43 = vmul.f32 %v132_v42, %v107_v41 }
 0x111   :  { %268 = vmatmul.mubr.msk.f32.vlgmr.msra.gmra.mrb[0].mxu1 %vm33_vm1, %v133_v43 }
 0x1e4   :  { %v214_v45 = vpop.f32.mrb[0].mxu1 }
 0x1e5   :  { %v215_v46 = vadd.f32 %v236_v44, %v214_v45  ;;  %v269_v47 = vpop.f32.mrb[1].mxu1 }
 0x1e7   :  { %219 = vst.msk [vmem:[#allocation2] sm:$0x3] %vm218_vm3, %v215_v46 }
 0x1e8   :  { %301 = shalt.err (!%p298_p4)
}
 0x1e9   :  { %s302_s16 = scalar_lea.hbm %s400_s5, 32 }
 0x1ea   :  { %p303_p5 = scmp.ne.s32.totalorder %s400_s5, %s302_s16  ;;  %p306_p6 = scmp.lt.u32.totalorder %s302_s16, %s400_s5 }
 0x1ec   :  { %p308_p7 = pnand %p306_p6, %p303_p5 }
 0x1ee   :  { %311 = shalt.err (!%p308_p7)
}
 0x1ef   :  { %229 = dma.vmem_to_hbm [thread:$0]  %s227_s12, 32, %s400_s5, [#allocation3]  }
 0x1f0   :  { %312 = dma.done.wait [#allocation3], 32  }
 0x1f1   :  { %313 = vsyncadd [#allocation3], 4294967264 }
 0x1f2   :  { %233 = vsyncpa [#allocation3], 1 }

// kernel: forward.3
= control target key start
LH: loop header
LB: loop body
LE: loop exit
PB: predicated region body
PF: predicated region fallthrough
CT: control target
= control target key end

     0   :  { %s2650_s25 = smov 0   ;;  %s2926_s0 = inlined_call_operand.vmem [shape: f32[2,10,32], index: 0, kind: input, shape index: {}]   ;;  %s2927_s1 = inlined_call_operand.vmem [shape: f32[1,32], index: 1, kind: input, shape index: {}]   ;;  %s2928_s2 = inlined_call_operand.vmem [shape: f32[1,32], index: 2, kind: input, shape index: {}]   ;;  %s2929_s3 = inlined_call_operand.vmem [shape: f32[32,96], index: 3, kind: input, shape index: {}]   ;;  %s2930_s4 = inlined_call_operand.vmem [shape: f32[1,96], index: 4, kind: input, shape index: {}]   ;;  %s2931_s5 = inlined_call_operand.vmem [shape: f32[32,32], index: 5, kind: input, shape index: {}]   ;;  %s2932_s6 = inlined_call_operand.vmem [shape: f32[1,32], index: 6, kind: input, shape index: {}]   ;;  %s2933_s7 = inlined_call_operand.vmem [shape: f32[1,32], index: 7, kind: input, shape index: {}]   ;;  %s2934_s8 = inlined_call_operand.vmem [shape: f32[1,32], index: 8, kind: input, shape index: {}]   ;;  %s2935_s9 = inlined_call_operand.vmem [shape: f32[32,128], index: 9, kind: input, shape index: {}]   ;;  %s2936_s10 = inlined_call_operand.vmem [shape: f32[1,128], index: 10, kind: input, shape index: {}]   ;;  %s2937_s11 = inlined_call_operand.vmem [shape: f32[128,32], index: 11, kind: input, shape index: {}]   ;;  %s2938_s12 = inlined_call_operand.vmem [shape: f32[1,32], index: 12, kind: input, shape index: {}]   ;;  %s2939_s13 = inlined_call_operand.vmem [shape: f32[2,10,32], index: 13, kind: output, shape index: {}]  }
   0x1 LB: > { %s2082_s26 = sadd.s32 4294967295, %s2566_s25   ;;  %p2086_p0 = scmp.ge.s32.totalorder %s2566_s25, 1  ;;  %s2566_s25 = sphi %s2650_s25, %s23_s25  }
   0x2   : > { %p387_p1 = scmp.lt.s32.totalorder %s2566_s25, 3 }
   0x4   : > { %p388_p2 = pnand %p2086_p0, %p387_p1 }
   0x5   : > { %p431_p3 = scmp.lt.s32.totalorder (!%p388_p2), %s2082_s26, 1  ;;  %vm445_vm0 = vcmask (!%p388_p2), 261120   ;;  %vm449_vm1 = vcmask (!%p388_p2), 254976   ;;  %v490_v14 = vld [vmem:[%s2929_s3] sm:$0xff] (!%p388_p2)  ;;  %v491_v15 = vld [vmem:[%s2929_s3 + $0x8] sm:$0xff] (!%p388_p2)  ;;  %v492_v16 = vld [vmem:[%s2929_s3 + $0x10] sm:$0xff] (!%p388_p2) }
   0x6   : > { %391 = sbr.rel (%p388_p2) target bundleno = 3743 (0xe9f), region = 72  ;;  %v2350_v17 = vpack.c.bf16 (!%p388_p2), %v491_v15, %v490_v14  ;;  %v493_v18 = vld [vmem:[%s2929_s3 + $0x18] sm:$0xff] (!%p388_p2)  ;;  %v2091_v27 = vld [vmem:[%s2927_s1] ss:$0 sm:$0xff] (!%p388_p2)  ;;  %vm594_vm2 = vcmask (!%p388_p2), 64512   ;;  %s2568_s14 = smov (!%p388_p2), 96  }
   0x7   : > { %v2354_v19 = vpack.c.bf16 (!%p388_p2), %v493_v18, %v492_v16  ;;  %v2092_v29 = vld [vmem:[%s2928_s2] ss:$0 sm:$0xff] (!%p388_p2)  ;;  %s2569_s15 = smov (!%p388_p2), 88   ;;  %s2570_s16 = smov (!%p388_p2), 120   ;;  %vm2715_vm3 = vmpackc.low (!%p388_p2), %vm594_vm2, %vm594_vm2  ;;  %vm680_vm4 = vcmask (!%p388_p2), 80896   ;;  %vm684_vm5 = vcmask (!%p388_p2), 74752  }
   0x8   : > { %2351 = vmatprep.subr.bf16.mxu1 (!%p388_p2), %v2350_v17  ;;  %v2093_v36 = vld [vmem:[%s2930_s4] ss:$0 sm:$0xff] (!%p388_p2)  ;;  %s2571_s17 = smov (!%p388_p2), 64   ;;  %vm715_vm6 = vcmask (!%p388_p2), 1041408   ;;  %vm2572_vm7 = vmmov (!%p388_p2), 1   ;;  %s2573_s18 = smov (!%p388_p2), 56  }
   0x9   : > { %2353 = vmatpush3.bf16.msra.mxu1 (!%p388_p2), %v2350_v17  ;;  %vm2730_vm8 = vmpackc.low (!%p388_p2), %vm715_vm6, %vm2572_vm7  ;;  %s2574_s19 = smov (!%p388_p2), 112   ;;  %s2575_s20 = smov (!%p388_p2), 72  }
   0xa   : > { %2355 = vmatprep.subr.bf16.mxu1 (!%p388_p2), %v2354_v19  ;;  %s2576_s21 = smov (!%p388_p2), 104   ;;  %s2577_s22 = smov (!%p388_p2), 80  }
   0xd   : > { %s2945_s26 = smov (!%p431_p3, %s2082_s26), 1  ;;  %2357 = vmatpush3.bf16.msra.mxu1 %v2354_v19 }
   0xe   : > { %s2141_s27 = sshll.u32 %s2945_s26, 4 }
   0xf   : > { %s435_s30 = scalar_lea.vmem %s2926_s0, %s2141_s27 }
  0x10   : > { %v2666_v0 = vld [vmem:[%s435_s30] sm:$0xff]  ;;  %v2668_v1 = vld [vmem:[%s435_s30 + $0x8] sm:$0x3]  ;;  %s2578_s30 = smov 48  }
  0x11   : > { %v446_v2 = vsel %vm445_vm0, %v2666_v0, 0.0  ;;  %v450_v3 = vsel %vm449_vm1, %v2668_v1, 0.0 }
  0x12   : > { %447 = vadd.xlane.f32.xlu0 %v446_v2 }
  0x16   : > { %451 = vadd.xlane.f32.xlu0 %v450_v3 }
  0x9f   : > { %v448_v4 = vpop.xlane.xlu0 %447 }
  0xa0   : > { %v454_v5 = vmul.f32 0.03125, %v448_v4 }
  0xa2   : > { %v456_v6 = vsub.f32 %v2666_v0, %v454_v5 }
  0xa3   : > { %v452_v7 = vpop.xlane.xlu0 %451 }
  0xa4   : > { %v455_v8 = vmul.f32 0.03125, %v452_v7  ;;  %v458_v9 = vmul.f32 %v456_v6, %v456_v6 }
  0xa6   : > { %v457_v10 = vsub.f32 %v2668_v1, %v455_v8  ;;  %v460_v11 = vsel %vm445_vm0, %v458_v9, 0.0 }
  0xa7   : > { %461 = vadd.xlane.f32.xlu1 %v460_v11 }
  0xa8   : > { %v459_v12 = vmul.f32 %v457_v10, %v457_v10 }
  0xaa   : > { %v463_v13 = vsel %vm449_vm1, %v459_v12, 0.0 }
  0xab   : > { %464 = vadd.xlane.f32.xlu1 %v463_v13 }
 0x134   : > { %v462_v20 = vpop.xlane.xlu1 %461 }
 0x135   : > { %v466_v21 = vmul.f32 0.03125, %v462_v20 }
 0x137   : > { %v468_v22 = vadd.f32 1e-05, %v466_v21 }
 0x138   : > { %v465_v23 = vpop.xlane.xlu1 %464 }
 0x139   : > { %2512 = vrsqrt.f32 %v468_v22  ;;  %v467_v24 = vmul.f32 0.03125, %v465_v23 }
 0x13b   : > { %v469_v25 = vadd.f32 1e-05, %v467_v24 }
 0x13d   : > { %2514 = vrsqrt.f32 %v469_v25 }
 0x143   : > { %v2513_v26 = vpop.eup %2512 }
 0x144   : > { %v472_v28 = vmul.f32 %v2513_v26, %v456_v6 }
 0x146   : > { %v480_v30 = vmul.f32 %v2091_v27, %v472_v28 }
 0x147   : > { %v2515_v31 = vpop.eup %2514 }
 0x148   : > { %v473_v32 = vmul.f32 %v2515_v31, %v457_v10  ;;  %v488_v33 = vadd.f32 %v2092_v29, %v480_v30 }
 0x14a   : > { %v481_v34 = vmul.f32 %v2091_v27, %v473_v32  ;;  %2225 = vmatprep.mubr.msk.f32.mxu1 %vm445_vm0, %v488_v33 }
 0x14c   : > { %v489_v35 = vadd.f32 %v2092_v29, %v481_v34 }
 0x14e   : > { %2226 = vmatmul.mubr.msk.f32.vlgmr.msra.gmra.mrb[0].mxu1 %vm445_vm0, %v489_v35 }
 0x221   : > { %v2227_v37 = vpop.f32.mrb[0].mxu1 }
 0x222   : > { %v579_v38 = vadd.f32 %v2227_v37, %v2093_v36  ;;  %v573_v39 = vpop.f32.mrb[1].mxu1 }
 0x223   : > { %v574_v40 = vadd.f32 %v2093_v36, %v573_v39 }
 0x224   : > { %v2710_v43 = vmul.f32 0.35355338, %v579_v38 }
 0x225   : > { %v2701_v41 = vpack.i.bf16 %v579_v38, %v574_v40  ;;  %v2703_v42 = vmul.f32 0.35355338, %v574_v40 }
 0x227   : > { %2473 = vrot.lane.b32.xlu0 %v2701_v41, %s2568_s14  ;;  %2232 = vmatprep.mubr.msk.f32.mxu1 %vm594_vm2, %v2703_v42  ;;  %s2579_s14 = smov 40  }
 0x22b   : > { %2483 = vrot.lane.b32.xlu0 %v2701_v41, %s2569_s15  ;;  %s440_s15 = scalar_lea.vmem %s2939_s13, %s2141_s27 }
 0x22f   : > { %793 = vrot.lane.b32.xlu0 %v2703_v42, %s2570_s16 }
 0x233   : > { %795 = vrot.lane.b32.xlu0 %v2710_v43, %s2570_s16 }
 0x299   : > { %v2474_v44 = vpop.permute.xlu0 %2473 }
 0x29a   : > { %v2476_v45 = vunpack.i.h.bf16 %v2474_v44  ;;  %v2475_v46 = vunpack.i.l.bf16 %v2474_v44 }
 0x29c   : > { %v2358_v48 = vpack.c.bf16 %v2476_v45, %v2475_v46 }
 0x29d   : > { %v2484_v3 = vpop.permute.xlu0 %2483 }
 0x29e   : > { %2360 = vmatprep.subr.msk.bf16.mxu1 %vm2715_vm3, %v2358_v48  ;;  %v2486_v5 = vunpack.i.h.bf16 %v2484_v3  ;;  %v2485_v6 = vunpack.i.l.bf16 %v2484_v3 }
 0x29f   : > { %2363 = vmatpush3.bf16.xpose.msk.msra.mxu1 %vm2715_vm3, %v2358_v48 }
 0x2a0   : > { %v2370_v11 = vpack.c.bf16 %v2486_v5, %v2485_v6 }
 0x2a1   : > { %v794_v16 = vpop.permute.xlu0 %793 }
 0x2a5   : > { %v796_v17 = vpop.permute.xlu0 %795 }
 0x2a6   : > { %2233 = vmatmul.mubr.msk.f32.vlgmr.msra.gmra.mrb[2].mxu1 %vm594_vm2, %v2710_v43 }
 0x379   : > { %v2234_v49 = vpop.f32.mrb[2].mxu1 }
 0x37a   : > { %v671_v50 = vpop.f32.mrb[3].mxu1  ;;  %v685_v52 = vsel %vm684_vm5, %v2234_v49, -inf }
 0x37b   : > { %v681_v51 = vsel %vm680_vm4, %v671_v50, -inf }
 0x37c   : > { %682 = vmax.xlane.f32.xlu1 %v681_v51 }
 0x380   : > { %686 = vmax.xlane.f32.xlu1 %v685_v52 }
 0x409   : > { %v683_v53 = vpop.xlane.xlu1 %682 }
 0x40a   : > { %v688_v54 = vsub.f32 %v671_v50, %v683_v53 }
 0x40c   : > { %v690_v57 = vmul.f32 1.442695, %v688_v54 }
 0x40d   : > { %v687_v55 = vpop.xlane.xlu1 %686 }
 0x40e   : > { %v689_v56 = vsub.f32 %v2234_v49, %v687_v55 }
 0x410   : > { %v692_v58 = vmul.f32 1.442695, %v689_v56 }
 0x412   : > { %2516 = vpow2.f32 %v692_v58  ;;  %v583_v58 = vld [vmem:[%s2931_s5 + $0x8] sm:$0xff] }
 0x413   : > { %2518 = vpow2.f32 %v690_v57  ;;  %2256 = vmatprep.subr.mxu0 %v583_v58 }
 0x414   : > { %2257 = vmatpush3.msra.mxu0 %v583_v58 }
 0x41c   : > { %v2517_v59 = vpop.eup %2516 }
 0x41d   : > { %v697_v60 = vsel %vm684_vm5, %v2517_v59, 0.0  ;;  %v2519_v61 = vpop.eup %2518 }
 0x41e   : > { %698 = vadd.xlane.f32.xlu1 %v697_v60  ;;  %v694_v62 = vsel %vm680_vm4, %v2519_v61, 0.0 }
 0x422   : > { %695 = vadd.xlane.f32.xlu1 %v694_v62 }
 0x433   : > { %2478 = vrot.lane.b32.xlu1 %v2701_v41, %s2571_s17 }
 0x4ab   : > { %v699_v63 = vpop.xlane.xlu1 %698 }
 0x4ac   : > { %2520 = vrcp.f32 %v699_v63 }
 0x4af   : > { %v696_v2 = vpop.xlane.xlu1 %695 }
 0x4b0   : > { %2522 = vrcp.f32 %v696_v2 }
 0x4b3   : > { %v2479_v4 = vpop.permute.xlu1 %2478 }
 0x4b4   : > { %v2481_v7 = vunpack.i.h.bf16 %v2479_v4  ;;  %v2480_v8 = vunpack.i.l.bf16 %v2479_v4 }
 0x4b6   : > { %v2364_v10 = vpack.c.bf16 %v2481_v7, %v2480_v8  ;;  %v2521_v12 = vpop.eup %2520 }
 0x4b7   : > { %v703_v15 = vmul.f32 %v2521_v12, %v2517_v59  ;;  %v582_v59 = vld [vmem:[%s2931_s5] sm:$0xff] }
 0x4b8   : > { %2366 = vmatprep.subr.msk.bf16.mxu1 %vm2730_vm8, %v2364_v10  ;;  %2261 = vmatprep.subr.mxu0 %v582_v59 }
 0x4b9   : > { %2369 = vmatpush3.bf16.msk.msra.mxu1 %vm2730_vm8, %v2364_v10 }
 0x4ba   : > { %v2523_v13 = vpop.eup %2522  ;;  %2372 = vmatprep.subr.msk.bf16.mxu1 %vm2715_vm3, %v2370_v11 }
 0x4bb   : > { %v702_v14 = vmul.f32 %v2523_v13, %v2519_v61 }
 0x4bd   : > { %2239 = vmatprep.mubr.msk.f32.mxu1 %vm680_vm4, %v702_v14 }
 0x4be   : > { %2240 = vmatmul.mubr.msk.f32.vlgmr.msra.gmra.mrb[4].mxu1 %vm680_vm4, %v703_v15 }
 0x4bf   : > { %2246 = vmatprep.mubr.msk.f32.mxu1 %vm594_vm2, %v794_v16 }
 0x4c2   : > { %2375 = vmatpush3.bf16.xpose.msk.msra.mxu1 %vm2715_vm3, %v2370_v11 }
 0x4c9   : > { %2247 = vmatmul.mubr.msk.f32.vlgmr.msra.gmra.mrb[6].mxu1 %vm594_vm2, %v796_v17 }
 0x591   : > { %v2746_v18 = vpop.f32.mrb[4].mxu1 }
 0x592   : > { %v2748_v19 = vpop.f32.mrb[5].mxu1 }
 0x59c   : > { %v2248_v20 = vpop.f32.mrb[6].mxu1 }
 0x59d   : > { %v875_v21 = vpop.f32.mrb[7].mxu1  ;;  %v887_v22 = vsel %vm684_vm5, %v2248_v20, -inf }
 0x59e   : > { %888 = vmax.xlane.f32.xlu0 %v887_v22  ;;  %v884_v23 = vsel %vm680_vm4, %v875_v21, -inf }
 0x59f   : > { %885 = vmax.xlane.f32.xlu1 %v884_v23 }
 0x5b0   : > { %2488 = vrot.lane.b32.xlu1 %v2701_v41, %s2573_s18 }
 0x5b4   : > { %1156 = vrot.lane.b32.xlu1 %v2703_v42, %s2574_s19 }
 0x5b8   : > { %1158 = vrot.lane.b32.xlu1 %v2710_v43, %s2574_s19 }
 0x5bc   : > { %2498 = vrot.lane.b32.xlu1 %v2701_v41, %s2575_s20 }
 0x5c0   : > { %1442 = vrot.lane.b32.xlu1 %v2710_v43, %s2576_s21 }
 0x62b   : > { %v889_v24 = vpop.xlane.xlu0 %888 }
 0x62c   : > { %v891_v25 = vsub.f32 %v2248_v20, %v889_v24  ;;  %v886_v26 = vpop.xlane.xlu1 %885 }
 0x62d   : > { %v890_v27 = vsub.f32 %v875_v21, %v886_v26 }
 0x62e   : > { %v894_v28 = vmul.f32 1.442695, %v891_v25 }
 0x62f   : > { %v892_v29 = vmul.f32 1.442695, %v890_v27 }
 0x630   : > { %2524 = vpow2.f32 %v894_v28  ;;  %v2489_v30 = vpop.permute.xlu1 %2488 }
 0x631   : > { %v2491_v31 = vunpack.i.h.bf16 %v2489_v30  ;;  %v2490_v32 = vunpack.i.l.bf16 %v2489_v30  ;;  %2526 = vpow2.f32 %v892_v29 }
 0x633   : > { %v2376_v33 = vpack.c.bf16 %v2491_v31, %v2490_v32 }
 0x634   : > { %v1157_v38 = vpop.permute.xlu1 %1156 }
 0x635   : > { %2378 = vmatprep.subr.msk.bf16.mxu1 %vm2730_vm8, %v2376_v33 }
 0x636   : > { %2381 = vmatpush3.bf16.msk.msra.mxu1 %vm2730_vm8, %v2376_v33 }
 0x638   : > { %v1159_v43 = vpop.permute.xlu1 %1158 }
 0x63a   : > { %v2525_v34 = vpop.eup %2524 }
 0x63b   : > { %v899_v35 = vsel %vm684_vm5, %v2525_v34, 0.0  ;;  %v2527_v36 = vpop.eup %2526 }
 0x63c   : > { %900 = vadd.xlane.f32.xlu0 %v899_v35  ;;  %v896_v37 = vsel %vm680_vm4, %v2527_v36, 0.0  ;;  %v2499_v49 = vpop.permute.xlu1 %2498 }
 0x63d   : > { %v2501_v52 = vunpack.i.h.bf16 %v2499_v49  ;;  %v2500_v53 = vunpack.i.l.bf16 %v2499_v49 }
 0x63f   : > { %v2394_v55 = vpack.c.bf16 %v2501_v52, %v2500_v53  ;;  %v585_v52 = vld [vmem:[%s2931_s5 + $0x18] sm:$0xff] }
 0x640   : > { %897 = vadd.xlane.f32.xlu0 %v896_v37  ;;  %v1443_v57 = vpop.permute.xlu1 %1442 }
 0x656   : > { %2493 = vrot.lane.b32.xlu0 %v2701_v41, %s2577_s22 }
 0x65a   : > { %1440 = vrot.lane.b32.xlu0 %v2703_v42, %s2576_s21 }
 0x6c9   : > { %v901_v39 = vpop.xlane.xlu0 %900 }
 0x6ca   : > { %2528 = vrcp.f32 %v901_v39 }
 0x6cd   : > { %v898_v40 = vpop.xlane.xlu0 %897 }
 0x6ce   : > { %2530 = vrcp.f32 %v898_v40 }
 0x6d1   : > { %v2494_v44 = vpop.permute.xlu0 %2493 }
 0x6d2   : > { %v2496_v45 = vunpack.i.h.bf16 %v2494_v44  ;;  %v2495_v46 = vunpack.i.l.bf16 %v2494_v44 }
 0x6d4   : > { %v2382_v48 = vpack.c.bf16 %v2496_v45, %v2495_v46  ;;  %v2529_v50 = vpop.eup %2528 }
 0x6d5   : > { %v905_v42 = vmul.f32 %v2529_v50, %v2525_v34  ;;  %v1441_v56 = vpop.permute.xlu0 %1440  ;;  %v584_v34 = vld [vmem:[%s2931_s5 + $0x10] sm:$0xff] }
 0x6d6   : > { %2384 = vmatprep.subr.msk.bf16.mxu1 %vm2715_vm3, %v2382_v48 }
 0x6d8   : > { %v2531_v51 = vpop.eup %2530 }
 0x6d9   : > { %v904_v54 = vmul.f32 %v2531_v51, %v2527_v36 }
 0x6db   : > { %2253 = vmatprep.mubr.msk.f32.mxu1 %vm680_vm4, %v904_v54 }
 0x6dc   : > { %2254 = vmatmul.mubr.msk.f32.vlgmr.msra.gmra.mrb[8].mxu1 %vm680_vm4, %v905_v42 }
 0x6dd   : > { %2387 = vmatpush3.bf16.xpose.msk.msra.mxu1 %vm2715_vm3, %v2382_v48  ;;  %2270 = vmatprep.mubr.msk.f32.mxu1 %vm594_vm2, %v1157_v38 }
 0x6de   : > { %2396 = vmatprep.subr.msk.bf16.mxu1 %vm2715_vm3, %v2394_v55 }
 0x6e4   : > { %2271 = vmatmul.mubr.msk.f32.vlgmr.msra.gmra.mrb[10].mxu1 %vm594_vm2, %v1159_v43 }
 0x6e5   : > { %2399 = vmatpush3.bf16.xpose.msk.msra.mxu1 %vm2715_vm3, %v2394_v55  ;;  %2289 = vmatprep.mubr.msk.f32.mxu1 %vm594_vm2, %v1441_v56  ;;  %v2132_v56 = vld [vmem:[%s2932_s6] ss:$0 sm:$0xff] }
 0x6ec   : > { %2290 = vmatmul.mubr.msk.f32.vlgmr.msra.gmra.mrb[12].mxu1 %vm594_vm2, %v1443_v57 }
 0x7af   : > { %v2255_v60 = vpop.f32.mrb[8].mxu1 }
 0x7b0   : > { %v985_v61 = vpop.f32.mrb[9].mxu1 }
 0x7b1   : > { %2258 = vmatprep.mubr.msk.f32.mxu0 %vm594_vm2, %v985_v61 }
 0x7b2   : > { %2259 = vmatmul.mubr.msk.f32.vlgmr.msra.gmra.mrb[0].mxu0 %vm594_vm2, %v2255_v60 }
 0x7b3   : > { %2263 = vmatprep.mubr.msk.f32.mxu0 %vm594_vm2, %v2748_v19  ;;  %2262 = vmatpush3.msra.mxu0 %v582_v59 }
 0x7b7   : > { %v2272_v47 = vpop.f32.mrb[10].mxu1 }
 0x7b8   : > { %v1238_v62 = vpop.f32.mrb[11].mxu1  ;;  %v1250_v63 = vsel %vm684_vm5, %v2272_v47, -inf }
 0x7b9   : > { %1251 = vmax.xlane.f32.xlu1 %v1250_v63  ;;  %v1247_v2 = vsel %vm680_vm4, %v1238_v62, -inf }
 0x7ba   : > { %1248 = vmax.xlane.f32.xlu0 %v1247_v2  ;;  %2264 = vmatmul.mubr.msk.f32.vlgmr.msra.gmra.mrb[0].mxu0 %vm594_vm2, %v2746_v18 }
 0x7bf   : > { %v2291_v3 = vpop.f32.mrb[12].mxu1 }
 0x7c0   : > { %v1522_v4 = vpop.f32.mrb[13].mxu1  ;;  %v1534_v6 = vsel %vm684_vm5, %v2291_v3, -inf }
 0x7c1   : > { %v1531_v5 = vsel %vm680_vm4, %v1522_v4, -inf }
 0x7c2   : > { %1532 = vmax.xlane.f32.xlu1 %v1531_v5 }
 0x7c6   : > { %1535 = vmax.xlane.f32.xlu1 %v1534_v6 }
 0x846   : > { %v1252_v7 = vpop.xlane.xlu1 %1251 }
 0x847   : > { %v1254_v8 = vsub.f32 %v2272_v47, %v1252_v7  ;;  %v1249_v10 = vpop.xlane.xlu0 %1248 }
 0x848   : > { %v1253_v11 = vsub.f32 %v1238_v62, %v1249_v10  ;;  %v1780_v10 = vld [vmem:[%s2935_s9 + $0x8] sm:$0xff] }
 0x849   : > { %v1257_v12 = vmul.f32 1.442695, %v1254_v8  ;;  %v1779_v8 = vld [vmem:[%s2935_s9] sm:$0xff] }
 0x84a   : > { %v1255_v13 = vmul.f32 1.442695, %v1253_v11  ;;  %v2406_v11 = vpack.c.bf16 %v1780_v10, %v1779_v8 }
 0x84b   : > { %2532 = vpow2.f32 %v1257_v12  ;;  %v1781_v12 = vld [vmem:[%s2935_s9 + $0x10] sm:$0xff] }
 0x84c   : > { %2534 = vpow2.f32 %v1255_v13  ;;  %2407 = vmatprep.subr.bf16.mxu1 %v2406_v11  ;;  %v1782_v13 = vld [vmem:[%s2935_s9 + $0x18] sm:$0xff] }
 0x84d   : > { %2409 = vmatpush3.bf16.msra.mxu1 %v2406_v11 }
 0x84f   : > { %v1533_v14 = vpop.xlane.xlu1 %1532 }
 0x850   : > { %v1537_v15 = vsub.f32 %v1522_v4, %v1533_v14  ;;  %v2410_v14 = vpack.c.bf16 %v1782_v13, %v1781_v12 }
 0x852   : > { %v1539_v19 = vmul.f32 1.442695, %v1537_v15  ;;  %2411 = vmatprep.subr.bf16.mxu1 %v2410_v14 }
 0x853   : > { %v1536_v16 = vpop.xlane.xlu1 %1535  ;;  %2413 = vmatpush3.bf16.msra.mxu1 %v2410_v14 }
 0x854   : > { %v1538_v17 = vsub.f32 %v2291_v3, %v1536_v16 }
 0x855   : > { %v2533_v18 = vpop.eup %2532 }
 0x856   : > { %v1541_v20 = vmul.f32 1.442695, %v1538_v17  ;;  %v1262_v21 = vsel %vm684_vm5, %v2533_v18, 0.0  ;;  %v2535_v22 = vpop.eup %2534 }
 0x857   : > { %1263 = vadd.xlane.f32.xlu0 %v1262_v21  ;;  %v1259_v23 = vsel %vm680_vm4, %v2535_v22, 0.0 }
 0x858   : > { %2536 = vpow2.f32 %v1541_v20 }
 0x859   : > { %2538 = vpow2.f32 %v1539_v19 }
 0x85b   : > { %1260 = vadd.xlane.f32.xlu0 %v1259_v23 }
 0x862   : > { %v2537_v24 = vpop.eup %2536 }
 0x863   : > { %v1546_v25 = vsel %vm684_vm5, %v2537_v24, 0.0  ;;  %v2539_v26 = vpop.eup %2538 }
 0x864   : > { %1547 = vadd.xlane.f32.xlu1 %v1546_v25  ;;  %v1543_v27 = vsel %vm680_vm4, %v2539_v26, 0.0 }
 0x868   : > { %1544 = vadd.xlane.f32.xlu1 %v1543_v27 }
 0x871   : > { %2503 = vrot.lane.b32.xlu0 %v2701_v41, %s2578_s30 }
 0x879   : > { %2508 = vrot.lane.b32.xlu1 %v2701_v41, %s2579_s14 }
 0x8e4   : > { %v1264_v28 = vpop.xlane.xlu0 %1263 }
 0x8e5   : > { %2540 = vrcp.f32 %v1264_v28 }
 0x8e8   : > { %v1261_v29 = vpop.xlane.xlu0 %1260 }
 0x8e9   : > { %2542 = vrcp.f32 %v1261_v29 }
 0x8ec   : > { %v2504_v30 = vpop.permute.xlu0 %2503 }
 0x8ed   : > { %v2506_v31 = vunpack.i.h.bf16 %v2504_v30  ;;  %v2505_v32 = vunpack.i.l.bf16 %v2504_v30 }
 0x8ef   : > { %v2388_v33 = vpack.c.bf16 %v2506_v31, %v2505_v32  ;;  %v2541_v36 = vpop.eup %2540  ;;  %v1925_v31 = vld [vmem:[%s2937_s11] sm:$0xff]  ;;  %v1926_v32 = vld [vmem:[%s2937_s11 + $0x8] sm:$0xff] }
 0x8f0   : > { %v1268_v38 = vmul.f32 %v2541_v36, %v2533_v18 }
 0x8f1   : > { %v1548_v35 = vpop.xlane.xlu1 %1547  ;;  %2390 = vmatprep.subr.msk.bf16.mxu0 %vm2730_vm8, %v2388_v33 }
 0x8f2   : > { %2393 = vmatpush3.bf16.msk.msra.mxu0 %vm2730_vm8, %v2388_v33  ;;  %v2414_v33 = vpack.c.bf16 %v1926_v32, %v1925_v31 }
 0x8f3   : > { %v2543_v41 = vpop.eup %2542  ;;  %2280 = vmatprep.subr.mxu0 %v584_v34 }
 0x8f4   : > { %v1267_v37 = vmul.f32 %v2543_v41, %v2535_v22  ;;  %v2133_v22 = vld [vmem:[%s2933_s7] ss:$0 sm:$0xff] }
 0x8f5   : > { %v1545_v39 = vpop.xlane.xlu1 %1544  ;;  %v1929_v41 = vld [vmem:[%s2937_s11 + $0x20] sm:$0xff] }
 0x8f6   : > { %2277 = vmatprep.mubr.msk.f32.mxu0 %vm680_vm4, %v1267_v37  ;;  %2544 = vrcp.f32 %v1545_v39  ;;  %v1930_v37 = vld [vmem:[%s2937_s11 + $0x28] sm:$0xff]  ;;  %v1931_v39 = vld [vmem:[%s2937_s11 + $0x30] sm:$0xff] }
 0x8f7   : > { %2278 = vmatmul.mubr.msk.f32.vlgmr.msra.gmra.mrb[2].mxu0 %vm680_vm4, %v1268_v38  ;;  %2546 = vrcp.f32 %v1548_v35  ;;  %v1928_v35 = vld [vmem:[%s2937_s11 + $0x18] sm:$0xff]  ;;  %v2422_v38 = vpack.c.bf16 %v1930_v37, %v1929_v41 }
 0x8f8   : > { %2281 = vmatpush3.msra.mxu0 %v584_v34  ;;  %v1927_v34 = vld [vmem:[%s2937_s11 + $0x10] sm:$0xff] }
 0x8f9   : > { %v2509_v40 = vpop.permute.xlu1 %2508  ;;  %v2418_v36 = vpack.c.bf16 %v1928_v35, %v1927_v34 }
 0x8fa   : > { %v2511_v43 = vunpack.i.h.bf16 %v2509_v40  ;;  %v2510_v44 = vunpack.i.l.bf16 %v2509_v40  ;;  %v1932_v40 = vld [vmem:[%s2937_s11 + $0x38] sm:$0xff] }
 0x8fc   : > { %v2400_v45 = vpack.c.bf16 %v2511_v43, %v2510_v44  ;;  %v2426_v43 = vpack.c.bf16 %v1932_v40, %v1931_v39  ;;  %v1933_v44 = vld [vmem:[%s2937_s11 + $0x40] sm:$0xff] }
 0x8fe   : > { %2402 = vmatprep.subr.msk.bf16.mxu0 %vm2730_vm8, %v2400_v45 }
 0x900   : > { %v2545_v46 = vpop.eup %2544 }
 0x901   : > { %v2547_v50 = vpop.eup %2546  ;;  %v1551_v51 = vmul.f32 %v2545_v46, %v2539_v26 }
 0x902   : > { %v1552_v53 = vmul.f32 %v2547_v50, %v2537_v24  ;;  %v2134_v24 = vld [vmem:[%s2934_s8] ss:$0 sm:$0xff] }
 0x9ca   : > { %v2279_v48 = vpop.f32.mrb[2].mxu0 }
 0x9cb   : > { %v1348_v49 = vpop.f32.mrb[3].mxu0 }
 0x9cc   : > { %2282 = vmatprep.mubr.msk.f32.mxu0 %vm594_vm2, %v1348_v49  ;;  %v1936_v49 = vld [vmem:[%s2937_s11 + $0x58] sm:$0xff] }
 0x9cd   : > { %2283 = vmatmul.mubr.msk.f32.vlgmr.msra.gmra.mrb[0].mxu0 %vm594_vm2, %v2279_v48  ;;  %v1935_v48 = vld [vmem:[%s2937_s11 + $0x50] sm:$0xff] }
 0x9ce   : > { %2405 = vmatpush3.bf16.msk.msra.mxu0 %vm2730_vm8, %v2400_v45  ;;  %2296 = vmatprep.mubr.msk.f32.mxu0 %vm680_vm4, %v1551_v51  ;;  %v1934_v45 = vld [vmem:[%s2937_s11 + $0x48] sm:$0xff]  ;;  %v2434_v50 = vpack.c.bf16 %v1936_v49, %v1935_v48  ;;  %v1937_v51 = vld [vmem:[%s2937_s11 + $0x60] sm:$0xff] }
 0x9cf   : > { %2299 = vmatprep.subr.mxu0 %v585_v52  ;;  %v2430_v46 = vpack.c.bf16 %v1934_v45, %v1933_v44 }
 0x9d1   : > { %2297 = vmatmul.mubr.msk.f32.vlgmr.msra.gmra.mrb[4].mxu0 %vm680_vm4, %v1552_v53 }
 0x9d2   : > { %2300 = vmatpush3.msra.mxu0 %v585_v52  ;;  %v1938_v52 = vld [vmem:[%s2937_s11 + $0x68] sm:$0xff] }
 0x9d3   : > { %2415 = vmatprep.subr.bf16.mxu0 %v2414_v33  ;;  %v2438_v53 = vpack.c.bf16 %v1938_v52, %v1937_v51 }
 0xaa4   : > { %v2298_v54 = vpop.f32.mrb[4].mxu0 }
 0xaa5   : > { %v1632_v42 = vpop.f32.mrb[5].mxu0 }
 0xaa6   : > { %2301 = vmatprep.mubr.msk.f32.mxu0 %vm594_vm2, %v1632_v42  ;;  %v1940_v42 = vld [vmem:[%s2937_s11 + $0x78] sm:$0xff] }
 0xaa7   : > { %2302 = vmatmul.mubr.msk.f32.vlgmr.msra.gmra.mrb[0].mxu0 %vm594_vm2, %v2298_v54  ;;  %v1939_v54 = vld [vmem:[%s2937_s11 + $0x70] sm:$0xff] }
 0xaa8   : > { %2417 = vmatpush3.bf16.msra.mxu0 %v2414_v33 }
 0xaa9   : > { %2419 = vmatprep.subr.bf16.mxu0 %v2418_v36 }
 0xaac   : > { %2421 = vmatpush3.bf16.msra.mxu0 %v2418_v36 }
 0xaad   : > { %2423 = vmatprep.subr.bf16.mxu0 %v2422_v38 }
 0xab0   : > { %2425 = vmatpush3.bf16.msra.mxu0 %v2422_v38 }
 0xab1   : > { %2427 = vmatprep.subr.bf16.mxu0 %v2426_v43 }
 0xab4   : > { %2429 = vmatpush3.bf16.msra.mxu0 %v2426_v43 }
 0xab5   : > { %2431 = vmatprep.subr.bf16.mxu0 %v2430_v46 }
 0xab8   : > { %2433 = vmatpush3.bf16.msra.mxu0 %v2430_v46 }
 0xab9   : > { %2435 = vmatprep.subr.bf16.mxu0 %v2434_v50 }
 0xabc   : > { %2437 = vmatpush3.bf16.msra.mxu0 %v2434_v50  ;;  %v2138_v50 = vld [vmem:[%s2938_s12] ss:$0 sm:$0xff] }
 0xabd   : > { %2439 = vmatprep.subr.bf16.mxu0 %v2438_v53 }
 0xac0   : > { %2441 = vmatpush3.bf16.msra.mxu0 %v2438_v53 }
 0xb7a   : > { %v2303_v55 = vpop.f32.mrb[0].mxu0 }
 0xb7b   : > { %v1725_v9 = vadd.f32 %v2303_v55, %v2668_v1  ;;  %v1713_v57 = vpop.f32.mrb[1].mxu0  ;;  %v2442_v55 = vpack.c.bf16 %v1940_v42, %v1939_v54 }
 0xb7c   : > { %v1724_v58 = vadd.f32 %v1713_v57, %v2666_v0 }
 0xb7d   : > { %v2828_v59 = vadd.f32 %v2132_v56, %v1725_v9  ;;  %2443 = vmatprep.subr.bf16.mxu0 %v2442_v55 }
 0xb7e   : > { %v2830_v60 = vadd.f32 %v2132_v56, %v1724_v58  ;;  %2445 = vmatpush3.bf16.msra.mxu0 %v2442_v55  ;;  %v2135_v56 = vld [vmem:[%s2936_s10] ss:$0 sm:$0xff] }
 0xb7f   : > { %v1740_v61 = vsel %vm449_vm1, %v2828_v59, 0.0 }
 0xb80   : > { %1741 = vadd.xlane.f32.xlu1 %v1740_v61  ;;  %v1737_v47 = vsel %vm445_vm0, %v2830_v60, 0.0 }
 0xb81   : > { %1738 = vadd.xlane.f32.xlu0 %v1737_v47 }
 0xc0d   : > { %v1742_v62 = vpop.xlane.xlu1 %1741 }
 0xc0e   : > { %v1744_v63 = vmul.f32 0.03125, %v1742_v62  ;;  %v1739_v2 = vpop.xlane.xlu0 %1738 }
 0xc0f   : > { %v1743_v3 = vmul.f32 0.03125, %v1739_v2 }
 0xc10   : > { %v1746_v1 = vsub.f32 %v2828_v59, %v1744_v63 }
 0xc11   : > { %v1745_v0 = vsub.f32 %v2830_v60, %v1743_v3 }
 0xc12   : > { %v1748_v6 = vmul.f32 %v1746_v1, %v1746_v1 }
 0xc13   : > { %v1747_v4 = vmul.f32 %v1745_v0, %v1745_v0 }
 0xc14   : > { %v1752_v7 = vsel %vm449_vm1, %v1748_v6, 0.0 }
 0xc15   : > { %v1749_v5 = vsel %vm445_vm0, %v1747_v4, 0.0 }
 0xc16   : > { %1750 = vadd.xlane.f32.xlu0 %v1749_v5 }
 0xc1a   : > { %1753 = vadd.xlane.f32.xlu0 %v1752_v7 }
 0xca3   : > { %v1751_v15 = vpop.xlane.xlu0 %1750 }
 0xca4   : > { %v1755_v16 = vmul.f32 0.03125, %v1751_v15 }
 0xca6   : > { %v1757_v17 = vadd.f32 1e-05, %v1755_v16 }
 0xca7   : > { %v1754_v18 = vpop.xlane.xlu0 %1753 }
 0xca8   : > { %2548 = vrsqrt.f32 %v1757_v17  ;;  %v1756_v19 = vmul.f32 0.03125, %v1754_v18 }
 0xcaa   : > { %v1758_v20 = vadd.f32 1e-05, %v1756_v19 }
 0xcac   : > { %2550 = vrsqrt.f32 %v1758_v20 }
 0xcb2   : > { %v2549_v21 = vpop.eup %2548 }
 0xcb3   : > { %v1761_v23 = vmul.f32 %v2549_v21, %v1745_v0 }
 0xcb5   : > { %v1769_v25 = vmul.f32 %v2133_v22, %v1761_v23 }
 0xcb6   : > { %v2551_v26 = vpop.eup %2550 }
 0xcb7   : > { %v1762_v27 = vmul.f32 %v2551_v26, %v1746_v1  ;;  %v1777_v28 = vadd.f32 %v2134_v24, %v1769_v25 }
 0xcb9   : > { %v1770_v29 = vmul.f32 %v2133_v22, %v1762_v27  ;;  %2312 = vmatprep.mubr.msk.f32.mxu1 %vm445_vm0, %v1777_v28 }
 0xcbb   : > { %v1778_v30 = vadd.f32 %v2134_v24, %v1770_v29 }
 0xcbd   : > { %2313 = vmatmul.mubr.msk.f32.vlgmr.msra.gmra.mrb[14].mxu1 %vm445_vm0, %v1778_v30 }
 0xd90   : > { %v2314_v9 = vpop.f32.mrb[14].mxu1 }
 0xd91   : > { %v1868_v57 = vadd.f32 %v2314_v9, %v2135_v56  ;;  %v1862_v58 = vpop.f32.mrb[15].mxu1 }
 0xd92   : > { %v1863_v61 = vadd.f32 %v2135_v56, %v1862_v58 }
 0xd93   : > { %v1874_v47 = vmul.f32 0.70710677, %v1868_v57  ;;  %v1872_v46 = vmul.f32 0.5, %v1868_v57 }
 0xd94   : > { %v1873_v62 = vmul.f32 0.70710677, %v1863_v61  ;;  %v1871_v44 = vmul.f32 0.5, %v1863_v61 }
 0xd95   : > { %v1876_v63 = vand.u32 2147483647, %v1874_v47  ;;  %vm1916_vm9 = vcmp.lt.f32.partialorder %v1874_v47, 0.0 }
 0xd96   : > { %v1875_v2 = vand.u32 2147483647, %v1873_v62  ;;  %vm1915_vm10 = vcmp.lt.f32.partialorder %v1873_v62, 0.0 }
 0xd97   : > { %v1878_v3 = vmul.f32 0.3275911, %v1876_v63  ;;  %v1904_v5 = vsub.f32 0.0, %v1876_v63 }
 0xd98   : > { %v1877_v1 = vmul.f32 0.3275911, %v1875_v2  ;;  %v1903_v6 = vsub.f32 0.0, %v1875_v2 }
 0xd99   : > { %v1880_v0 = vadd.f32 1.0, %v1878_v3  ;;  %v1906_v8 = vmul.f32 %v1904_v5, %v1876_v63 }
 0xd9a   : > { %v1879_v4 = vadd.f32 1.0, %v1877_v1  ;;  %v1905_v12 = vmul.f32 %v1903_v6, %v1875_v2 }
 0xd9b   : > { %2552 = vrcp.f32 %v1880_v0  ;;  %v1909_v15 = vmul.f32 1.442695, %v1906_v8 }
 0xd9c   : > { %2554 = vrcp.f32 %v1879_v4  ;;  %v1907_v18 = vmul.f32 1.442695, %v1905_v12 }
 0xd9d   : > { %2556 = vpow2.f32 %v1909_v15 }
 0xd9e   : > { %2558 = vpow2.f32 %v1907_v18 }
 0xda5   : > { %v2553_v7 = vpop.eup %2552 }
 0xda6   : > { %v2555_v10 = vpop.eup %2554  ;;  %v1886_v11 = vmul.f32 1.0614054, %v2553_v7 }
 0xda7   : > { %v1885_v13 = vmul.f32 1.0614054, %v2555_v10  ;;  %v2557_v31 = vpop.eup %2556 }
 0xda8   : > { %v1888_v14 = vadd.f32 -1.4531521, %v1886_v11  ;;  %v2559_v33 = vpop.eup %2558 }
 0xda9   : > { %v1887_v16 = vadd.f32 -1.4531521, %v1885_v13 }
 0xdaa   : > { %v1890_v17 = vmul.f32 %v2553_v7, %v1888_v14 }
 0xdab   : > { %v1889_v19 = vmul.f32 %v2555_v10, %v1887_v16 }
 0xdac   : > { %v1892_v20 = vadd.f32 1.4214138, %v1890_v17 }
 0xdad   : > { %v1891_v21 = vadd.f32 1.4214138, %v1889_v19 }
 0xdae   : > { %v1894_v22 = vmul.f32 %v2553_v7, %v1892_v20 }
 0xdaf   : > { %v1893_v23 = vmul.f32 %v2555_v10, %v1891_v21 }
 0xdb0   : > { %v1896_v24 = vadd.f32 -0.28449672, %v1894_v22 }
 0xdb1   : > { %v1895_v25 = vadd.f32 -0.28449672, %v1893_v23 }
 0xdb2   : > { %v1898_v26 = vmul.f32 %v2553_v7, %v1896_v24 }
 0xdb3   : > { %v1897_v27 = vmul.f32 %v2555_v10, %v1895_v25 }
 0xdb4   : > { %v1900_v28 = vadd.f32 0.2548296, %v1898_v26 }
 0xdb5   : > { %v1899_v29 = vadd.f32 0.2548296, %v1897_v27 }
 0xdb6   : > { %v1902_v30 = vmul.f32 %v2553_v7, %v1900_v28 }
 0xdb7   : > { %v1901_v32 = vmul.f32 %v2555_v10, %v1899_v29 }
 0xdb8   : > { %v1912_v34 = vmul.f32 %v2557_v31, %v1902_v30 }
 0xdb9   : > { %v1911_v35 = vmul.f32 %v2559_v33, %v1901_v32 }
 0xdba   : > { %v1914_v36 = vsub.f32 1.0, %v1912_v34 }
 0xdbb   : > { %v1913_v41 = vsub.f32 1.0, %v1911_v35 }
 0xdbc   : > { %v1918_v37 = vsub.f32 0.0, %v1914_v36 }
 0xdbd   : > { %v1917_v38 = vsub.f32 0.0, %v1913_v41 }
 0xdbe   : > { %v1920_v39 = vsel %vm1916_vm9, %v1918_v37, %v1914_v36 }
 0xdbf   : > { %v1922_v40 = vadd.f32 1.0, %v1920_v39  ;;  %v1919_v43 = vsel %vm1915_vm10, %v1917_v38, %v1913_v41 }
 0xdc0   : > { %v1921_v45 = vadd.f32 1.0, %v1919_v43 }
 0xdc1   : > { %v1924_v49 = vmul.f32 %v1922_v40, %v1872_v46 }
 0xdc2   : > { %v1923_v48 = vmul.f32 %v1921_v45, %v1871_v44 }
 0xdc4   : > { %2347 = vmatprep.mubr.f32.mxu0 %v1923_v48 }
 0xdc5   : > { %2348 = vmatmul.mubr.f32.vlgmr.msra.gmra.mrb[6].mxu0 %v1924_v49 }
 0xe98   : > { %v2349_v51 = vpop.f32.mrb[6].mxu0 }
 0xe99   : > { %v2020_v52 = vadd.f32 %v2349_v51, %v2138_v50  ;;  %v2014_v53 = vpop.f32.mrb[7].mxu0 }
 0xe9a   : > { %v2015_v54 = vadd.f32 %v2138_v50, %v2014_v53 }
 0xe9b   : > { %v2024_v42 = vadd.f32 %v2020_v52, %v2828_v59 }
 0xe9c   : > { %v2023_v55 = vadd.f32 %v2015_v54, %v2830_v60 }
 0xe9d   : > { %2026 = vst.msk [vmem:[%s440_s15 + $0x8] sm:$0x3] %vm449_vm1, %v2024_v42 }
 0xe9e   : > { %2025 = vst.msk [vmem:[%s440_s15] sm:$0xff] %vm445_vm0, %v2023_v55 }
 0xe9f PF: > { %s23_s25 = sadd.s32 1, %s2566_s25  }
 0xea0   : > { %p20_p4 = scmp.ge.s32.totalorder %s23_s25, 4  }
 0xea2   :  { %22 = sbr.rel (!%p20_p4) target bundleno = 1 (0x1), region = 102 }

</bundles_post_ra>
